<compile_context>
chip_gen: v5e
topology: v5e:2x2
jax: 0.10.0
libtpu: 0.0.40
codegen_flags: <defaults>
</compile_context>

<pallas_src>
import jax
import jax.numpy as jnp
from jax import lax
from jax.experimental import pallas as pl
from jax.experimental.pallas import tpu as pltpu

# ---------------------------------------------------------------------------
# Config (synthetic, mirrors cfg.MODEL.DETNET.*)
# ---------------------------------------------------------------------------
NUM_CLASSES = 8
BIAS_VALUE = -2.19
IN_CH = 64            # the PyTorch module hard-codes in_channel = 64
ROW_TILE = 8          # max output rows per grid step


def _round_up(v, m):
    return (v + m - 1) // m * m


def _pick_row_tile(h, max_tile=ROW_TILE):
    """Largest divisor of h that is <= max_tile (keeps VMEM bounded even when
    h is not a multiple of ROW_TILE)."""
    for t in range(min(max_tile, h), 0, -1):
        if h % t == 0:
            return t
    return h


# ---------------------------------------------------------------------------
# Pallas kernel: fused cls/wh/reg heads for one halo'd row tile of one image.
#   Conv3x3(64->192) + bias + ReLU + block-diag Conv1x1(192->12) + bias
#   + sigmoid on the first `n_cls` output channels.
# ---------------------------------------------------------------------------
def _make_fused_head_kernel(th, wp, n_cls):
    l = th * wp                                   # output positions per tile
    offsets = tuple(dy * wp + dx for dy in range(3) for dx in range(3))

    def kernel(x_ref, w3_ref, b3_ref, w1_ref, b1_ref, o_ref):
        # x_ref : (1, C, Lin)   bf16  flattened, halo'd, padded row tile (CHW)
        # w3_ref: (192, 9*C)    bf16  fused 3x3 weights (tap-major on K)
        # b3_ref: (192, 1)      f32
        # w1_ref: (12, 192)     bf16  block-diagonal fused 1x1 weights
        # b1_ref: (12, 1)       f32
        # o_ref : (1, 12, L)    f32   channel-major output (HW on lanes)
        x = x_ref[0]                                           # (C, Lin)
        # 9 shifted taps, concatenated on the contraction axis -> (9*C, L).
        taps = jnp.concatenate([x[:, off:off + l] for off in offsets], axis=0)
        # 3x3 conv for all three heads as ONE K=576 matmul on the MXU.
        feat = jnp.dot(w3_ref[...], taps,
                       preferred_element_type=jnp.float32)     # (192, L) f32
        feat = jnp.maximum(feat + b3_ref[...], 0.0).astype(jnp.bfloat16)
        # Block-diagonal 1x1 conv for all heads (single small MXU matmul).
        out = jnp.dot(w1_ref[...], feat,
                      preferred_element_type=jnp.float32) + b1_ref[...]  # (12, L)
        # Sigmoid only on the cls channels (rows < n_cls); keeps one full-tile
        # lane-dense store instead of two sub-8-sublane partial stores.
        row = lax.broadcasted_iota(jnp.int32, out.shape, 0)
        out = jnp.where(row < n_cls, jax.nn.sigmoid(out), out)
        o_ref[0] = out.astype(o_ref.dtype)

    return kernel


def fused_head_pallas(xt, w3r, b3r, w1r, b1r, *, th, wp, n_cls):
    """xt: (G, C, Lin) bf16 -> (G, Cout, TH*Wp) f32, G = N * n_row_tiles."""
    g, c, lin = xt.shape
    cf, k9c = w3r.shape          # (192, 576)
    cout = w1r.shape[0]          # 12
    l = th * wp

    cost = pl.CostEstimate(
        flops=2 * g * l * (cf * k9c + cout * cf),
        transcendentals=g * cout * l,                 # sigmoid exp (masked after)
        bytes_accessed=(xt.size * 2 + w3r.size * 2 + w1r.size * 2
                        + b3r.size * 4 + b1r.size * 4 + g * cout * l * 4),
    )

    return pl.pallas_call(
        _make_fused_head_kernel(th, wp, n_cls),
        out_shape=jax.ShapeDtypeStruct((g, cout, l), jnp.float32),
        grid=(g,),
        in_specs=[
            pl.BlockSpec((1, c, lin), lambda i: (i, 0, 0)),
            pl.BlockSpec((cf, k9c), lambda i: (0, 0)),      # weights: constant
            pl.BlockSpec((cf, 1), lambda i: (0, 0)),        #   index maps ->
            pl.BlockSpec((cout, cf), lambda i: (0, 0)),     #   stay resident
            pl.BlockSpec((cout, 1), lambda i: (0, 0)),
        ],
        out_specs=pl.BlockSpec((1, cout, l), lambda i: (i, 0, 0)),
        compiler_params=pltpu.CompilerParams(
            dimension_semantics=("parallel",),
            vmem_limit_bytes=32 * 1024 * 1024,
        ),
        cost_estimate=cost,
    )(xt, w3r, b3r, w1r, b1r)


# ---------------------------------------------------------------------------
# Wrapper glue: fuse parameters, build halo'd row tiles, unpack outputs.
# ---------------------------------------------------------------------------
def _block_diag(mats):
    rows = sum(m.shape[0] for m in mats)
    cols = sum(m.shape[1] for m in mats)
    out = jnp.zeros((rows, cols), mats[0].dtype)
    r = c = 0
    for m in mats:
        out = out.at[r:r + m.shape[0], c:c + m.shape[1]].set(m)
        r += m.shape[0]
        c += m.shape[1]
    return out


def _fuse_params(params):
    heads = ("cls", "wh", "reg")

    def conv3_rows(p):
        w = p["w3"]                                   # (O, C, 3, 3) OIHW
        o = w.shape[0]
        # column index = (dy*3 + dx)*C + c  -> matches in-kernel tap concat
        return jnp.transpose(w, (0, 2, 3, 1)).reshape(o, -1)

    w3r = jnp.concatenate([conv3_rows(params[h]) for h in heads], axis=0)   # (192,576)
    b3r = jnp.concatenate([params[h]["b3"] for h in heads], axis=0)[:, None]
    w1r = _block_diag([params[h]["w1"][:, :, 0, 0] for h in heads])         # (12,192)
    b1r = jnp.concatenate([params[h]["b1"] for h in heads], axis=0)[:, None]
    n_cls = int(params["cls"]["w1"].shape[0])
    return (w3r.astype(jnp.bfloat16), b3r.astype(jnp.float32),
            w1r.astype(jnp.bfloat16), b1r.astype(jnp.float32), n_cls)


def _build_row_tiles(x_nchw, th):
    """NCHW -> (N*n_tiles, C, Lin) bf16: spatially padded, halo'd, flattened."""
    n, c, h, w = x_nchw.shape
    wp = w + 2
    thp = th + 2
    x_bf = x_nchw.astype(jnp.bfloat16)                          # cast before staging
    xpad = jnp.pad(x_bf, ((0, 0), (0, 0), (1, 1), (1, 1)))      # (N, C, H+2, W+2)
    n_tiles = h // th
    tiles = [xpad[:, :, t * th: t * th + thp, :] for t in range(n_tiles)]
    xt = jnp.stack(tiles, axis=1)                               # (N, T, C, THp, Wp)
    xt = xt.reshape(n * n_tiles, c, thp * wp)
    # +2 tail so the (dy=2, dx=2) tap slice stays in bounds; round lanes to 128.
    lin = _round_up(thp * wp + 2, 128)
    xt = jnp.pad(xt, ((0, 0), (0, 0), (0, lin - thp * wp)))
    return xt, n_tiles


# ---------------------------------------------------------------------------
# Parameter init (deterministic, synthetic — not a checkpoint load).
# PyTorch Conv2d weight layout: (out, in, kh, kw).
# ---------------------------------------------------------------------------
def init_single_head(key, in_ch, out_ch, bias_fill=False, bias_value=0.0):
    k3, k1 = jax.random.split(key)
    w3 = 0.05 * jax.random.normal(k3, (in_ch, in_ch, 3, 3), jnp.float32)
    b3 = jnp.zeros((in_ch,), jnp.float32)
    w1 = 0.05 * jax.random.normal(k1, (out_ch, in_ch, 1, 1), jnp.float32)
    b1 = jnp.full((out_ch,), bias_value if bias_fill else 0.0, jnp.float32)
    return dict(w3=w3, b3=b3, w1=w1, b1=b1)


# ---------------------------------------------------------------------------
# CenternetHead forward (NCHW in, NCHW out — matches the PyTorch module)
# ---------------------------------------------------------------------------
@jax.jit
def centernet_head_forward(x_nchw, params):
    n, c, h, w = x_nchw.shape
    th = _pick_row_tile(h)
    wp = w + 2

    w3r, b3r, w1r, b1r, n_cls = _fuse_params(params)
    xt, n_tiles = _build_row_tiles(x_nchw, th)

    out = fused_head_pallas(xt, w3r, b3r, w1r, b1r, th=th, wp=wp, n_cls=n_cls)
    cout = out.shape[1]
    out = out.reshape(n, n_tiles, cout, th, wp)
    out = jnp.transpose(out, (0, 2, 1, 3, 4)).reshape(n, cout, h, wp)[..., :w]

    return {
        "cls": out[:, :n_cls],
        "wh": out[:, n_cls:n_cls + 2],
        "reg": out[:, n_cls + 2:n_cls + 4],
    }


# ---------------------------------------------------------------------------
# Pure-JAX f32 reference (lax.conv) for a correctness check
# ---------------------------------------------------------------------------
def _ref_single_head(x_nchw, p, sigmoid):
    dn = ("NCHW", "OIHW", "NCHW")
    y = lax.conv_general_dilated(x_nchw, p["w3"], (1, 1), "SAME",
                                 dimension_numbers=dn)
    y = y + p["b3"][None, :, None, None]
    y = jnp.maximum(y, 0.0)
    y = lax.conv_general_dilated(y, p["w1"], (1, 1), "SAME",
                                 dimension_numbers=dn)
    y = y + p["b1"][None, :, None, None]
    return jax.nn.sigmoid(y) if sigmoid else y


def _ref_forward(x_nchw, params):
    return {
        "cls": _ref_single_head(x_nchw, params["cls"], True),
        "wh": _ref_single_head(x_nchw, params["wh"], False),
        "reg": _ref_single_head(x_nchw, params["reg"], False),
    }


if __name__ == "__main__":
    key = jax.random.PRNGKey(0)
    kx, kc, kwh, krg = jax.random.split(key, 4)

    # Module-consistent small shapes: batch=2, in_channels=64, spatial=16x16.
    N, H, W = 2, 16, 16
    x = jax.random.normal(kx, (N, IN_CH, H, W), jnp.float32)   # NCHW like PyTorch

    params = {
        "cls": init_single_head(kc, IN_CH, NUM_CLASSES,
                                bias_fill=True, bias_value=BIAS_VALUE),
        "wh": init_single_head(kwh, IN_CH, 2),
        "reg": init_single_head(krg, IN_CH, 2),
    }

    pred = centernet_head_forward(x, params)
    jax.block_until_ready(pred)

    # Sanity check vs. a pure-f32 conv reference.  Tolerance accounts for the
    # bf16 activation/weight path with f32 accumulation (still easily catches
    # structural / tap-ordering bugs).
    ref = _ref_forward(x, params)
    for k in ("cls", "wh", "reg"):
        assert pred[k].shape == ref[k].shape, (k, pred[k].shape, ref[k].shape)
        err = float(jnp.max(jnp.abs(pred[k] - ref[k])))
        assert jnp.allclose(pred[k], ref[k], atol=5e-2, rtol=5e-2), (k, err)

    print("KERNEL_OK")
</pallas_src>

<mosaic_0001>
module attributes {stable_mosaic.version = 11 : i64} {
  func.func @kernel(%arg0: i32, %arg1: memref<1x64x256xbf16, #tpu.memory_space<vmem>>, %arg2: memref<192x576xbf16, #tpu.memory_space<vmem>>, %arg3: memref<192x1xf32, #tpu.memory_space<vmem>>, %arg4: memref<12x192xbf16, #tpu.memory_space<vmem>>, %arg5: memref<12x1xf32, #tpu.memory_space<vmem>>, %arg6: memref<1x12x144xf32, #tpu.memory_space<vmem>>) attributes {dimension_semantics = [#tpu.dimension_semantics<parallel>], iteration_bounds = array<i64: 4>, scalar_prefetch = 0 : i64, scratch_operands = 0 : i64, tpu.core_type = #tpu.core_type<tc>, window_params = [{transform_indices = @transform_0, window_bounds = array<i64: 1, 64, 256>}, {pipeline_mode = #tpu.pipeline_mode<synchronous>, transform_indices = @transform_1, window_bounds = array<i64: 192, 576>}, {pipeline_mode = #tpu.pipeline_mode<synchronous>, transform_indices = @transform_2, window_bounds = array<i64: 192, 1>}, {pipeline_mode = #tpu.pipeline_mode<synchronous>, transform_indices = @transform_3, window_bounds = array<i64: 12, 192>}, {pipeline_mode = #tpu.pipeline_mode<synchronous>, transform_indices = @transform_4, window_bounds = array<i64: 12, 1>}, {transform_indices = @transform_5, window_bounds = array<i64: 1, 12, 144>}]} {
    %c0 = arith.constant 0 : index
    %c0_0 = arith.constant 0 : index
    %c0_1 = arith.constant 0 : index
    %0 = vector.load %arg1[%c0, %c0_0, %c0_1] : memref<1x64x256xbf16, #tpu.memory_space<vmem>>, vector<1x64x256xbf16>
    %1 = vector.shape_cast %0 : vector<1x64x256xbf16> to vector<64x256xbf16>
    %2 = vector.extract_strided_slice %1 {offsets = [0, 0], sizes = [64, 144], strides = [1, 1]} : vector<64x256xbf16> to vector<64x144xbf16>
    %3 = vector.extract_strided_slice %1 {offsets = [0, 1], sizes = [64, 144], strides = [1, 1]} : vector<64x256xbf16> to vector<64x144xbf16>
    %4 = vector.extract_strided_slice %1 {offsets = [0, 2], sizes = [64, 144], strides = [1, 1]} : vector<64x256xbf16> to vector<64x144xbf16>
    %5 = vector.extract_strided_slice %1 {offsets = [0, 18], sizes = [64, 144], strides = [1, 1]} : vector<64x256xbf16> to vector<64x144xbf16>
    %6 = vector.extract_strided_slice %1 {offsets = [0, 19], sizes = [64, 144], strides = [1, 1]} : vector<64x256xbf16> to vector<64x144xbf16>
    %7 = vector.extract_strided_slice %1 {offsets = [0, 20], sizes = [64, 144], strides = [1, 1]} : vector<64x256xbf16> to vector<64x144xbf16>
    %8 = vector.extract_strided_slice %1 {offsets = [0, 36], sizes = [64, 144], strides = [1, 1]} : vector<64x256xbf16> to vector<64x144xbf16>
    %9 = vector.extract_strided_slice %1 {offsets = [0, 37], sizes = [64, 144], strides = [1, 1]} : vector<64x256xbf16> to vector<64x144xbf16>
    %10 = vector.extract_strided_slice %1 {offsets = [0, 38], sizes = [64, 144], strides = [1, 1]} : vector<64x256xbf16> to vector<64x144xbf16>
    %11 = tpu.concatenate %2, %3, %4, %5, %6, %7, %8, %9, %10 in 0 : vector<64x144xbf16>, vector<64x144xbf16>, vector<64x144xbf16>, vector<64x144xbf16>, vector<64x144xbf16>, vector<64x144xbf16>, vector<64x144xbf16>, vector<64x144xbf16>, vector<64x144xbf16> -> vector<576x144xbf16>
    %c0_2 = arith.constant 0 : index
    %c0_3 = arith.constant 0 : index
    %12 = vector.load %arg2[%c0_2, %c0_3] : memref<192x576xbf16, #tpu.memory_space<vmem>>, vector<192x576xbf16>
    %cst = arith.constant dense<0.000000e+00> : vector<192x144xf32>
    %13 = tpu.matmul %12, %11, %cst {dimension_numbers = #tpu.dot_dimension_numbers<[1], [0], [0], [1], [0, 0, 1, 1], [], []>} : vector<192x576xbf16>, vector<576x144xbf16>, vector<192x144xf32> -> vector<192x144xf32>
    %c0_4 = arith.constant 0 : index
    %c0_5 = arith.constant 0 : index
    %14 = vector.load %arg3[%c0_4, %c0_5] : memref<192x1xf32, #tpu.memory_space<vmem>>, vector<192x1xf32>
    %15 = vector.broadcast %14 : vector<192x1xf32> to vector<192x144xf32>
    %16 = arith.addf %13, %15 : vector<192x144xf32>
    %cst_6 = arith.constant 0.000000e+00 : f32
    %17 = vector.broadcast %cst_6 : f32 to vector<192x144xf32>
    %18 = arith.maximumf %16, %17 : vector<192x144xf32>
    %19 = arith.truncf %18 : vector<192x144xf32> to vector<192x144xbf16>
    %c0_7 = arith.constant 0 : index
    %c0_8 = arith.constant 0 : index
    %20 = vector.load %arg4[%c0_7, %c0_8] : memref<12x192xbf16, #tpu.memory_space<vmem>>, vector<12x192xbf16>
    %cst_9 = arith.constant dense<0.000000e+00> : vector<12x144xf32>
    %21 = tpu.matmul %20, %19, %cst_9 {dimension_numbers = #tpu.dot_dimension_numbers<[1], [0], [0], [1], [0, 0, 1, 1], [], []>} : vector<12x192xbf16>, vector<192x144xbf16>, vector<12x144xf32> -> vector<12x144xf32>
    %c0_10 = arith.constant 0 : index
    %c0_11 = arith.constant 0 : index
    %22 = vector.load %arg5[%c0_10, %c0_11] : memref<12x1xf32, #tpu.memory_space<vmem>>, vector<12x1xf32>
    %23 = vector.broadcast %22 : vector<12x1xf32> to vector<12x144xf32>
    %24 = arith.addf %21, %23 : vector<12x144xf32>
    %25 = tpu.iota {dimensions = array<i32: 0>} : vector<12x144xi32>
    %c8_i32 = arith.constant 8 : i32
    %26 = vector.broadcast %c8_i32 : i32 to vector<12x144xi32>
    %27 = arith.cmpi slt, %25, %26 : vector<12x144xi32>
    %28 = arith.negf %24 : vector<12x144xf32>
    %29 = math.exp %28 : vector<12x144xf32>
    %cst_12 = arith.constant 1.000000e+00 : f32
    %30 = vector.broadcast %cst_12 : f32 to vector<12x144xf32>
    %31 = arith.addf %30, %29 : vector<12x144xf32>
    %32 = arith.divf %30, %31 : vector<12x144xf32>
    %33 = arith.select %27, %32, %24 : vector<12x144xi1>, vector<12x144xf32>
    %c0_13 = arith.constant 0 : index
    %c0_14 = arith.constant 0 : index
    %c0_15 = arith.constant 0 : index
    %34 = vector.load %arg6[%c0_13, %c0_14, %c0_15] : memref<1x12x144xf32, #tpu.memory_space<vmem>>, vector<1x12x144xf32>
    %35 = vector.shape_cast %34 : vector<1x12x144xf32> to vector<12x144xf32>
    %36 = vector.shape_cast %33 : vector<12x144xf32> to vector<1x12x144xf32>
    tpu.vector_store %arg6[%c0_13, %c0_14, %c0_15], %36 {strides = array<i32>} : memref<1x12x144xf32, #tpu.memory_space<vmem>>, vector<1x12x144xf32>,
    return
  }
  func.func @transform_0(%arg0: i32) -> (i32, i32, i32) {
    %c0_i32 = arith.constant 0 : i32
    %c0_i32_0 = arith.constant 0 : i32
    %c0_i32_1 = arith.constant 0 : i32
    return %arg0, %c0_i32, %c0_i32_0 : i32, i32, i32
  }
  func.func @transform_1(%arg0: i32) -> (i32, i32) {
    %c0_i32 = arith.constant 0 : i32
    %c0_i32_0 = arith.constant 0 : i32
    %c0_i32_1 = arith.constant 0 : i32
    return %c0_i32, %c0_i32_0 : i32, i32
  }
  func.func @transform_2(%arg0: i32) -> (i32, i32) {
    %c0_i32 = arith.constant 0 : i32
    %c0_i32_0 = arith.constant 0 : i32
    %c0_i32_1 = arith.constant 0 : i32
    return %c0_i32, %c0_i32_0 : i32, i32
  }
  func.func @transform_3(%arg0: i32) -> (i32, i32) {
    %c0_i32 = arith.constant 0 : i32
    %c0_i32_0 = arith.constant 0 : i32
    %c0_i32_1 = arith.constant 0 : i32
    return %c0_i32, %c0_i32_0 : i32, i32
  }
  func.func @transform_4(%arg0: i32) -> (i32, i32) {
    %c0_i32 = arith.constant 0 : i32
    %c0_i32_0 = arith.constant 0 : i32
    %c0_i32_1 = arith.constant 0 : i32
    return %c0_i32, %c0_i32_0 : i32, i32
  }
  func.func @transform_5(%arg0: i32) -> (i32, i32, i32) {
    %c0_i32 = arith.constant 0 : i32
    %c0_i32_0 = arith.constant 0 : i32
    %c0_i32_1 = arith.constant 0 : i32
    return %arg0, %c0_i32, %c0_i32_0 : i32, i32, i32
  }
}

</mosaic_0001>

<bundles_post_ra>
// kernel: centernet_head_forward.1
= control target key start
LH: loop header
LB: loop body
LE: loop exit
PB: predicated region body
PF: predicated region fallthrough
CT: control target
= control target key end

     0   :  { %s2533_s18 = smov 0   ;;  %s3912_s0 = inlined_call_operand.vmem [shape: bf16[4,64,256], index: 0, kind: input, shape index: {}]   ;;  %s3913_s1 = inlined_call_operand.vmem [shape: bf16[192,576], index: 1, kind: input, shape index: {}]   ;;  %s3914_s2 = inlined_call_operand.vmem [shape: f32[192,1], index: 2, kind: input, shape index: {}]   ;;  %s3915_s3 = inlined_call_operand.vmem [shape: bf16[12,192], index: 3, kind: input, shape index: {}]   ;;  %s3916_s4 = inlined_call_operand.vmem [shape: f32[12,1], index: 4, kind: input, shape index: {}]   ;;  %s3917_s5 = inlined_call_operand.vmem [shape: f32[4,12,144], index: 5, kind: output, shape index: {}]  }
   0x1 LB: > { %s2049_s19 = sadd.s32 4294967295, %s2492_s18   ;;  %p2053_p0 = scmp.ge.s32.totalorder %s2492_s18, 1  ;;  %s2492_s18 = sphi %s2533_s18, %s15_s18  }
   0x2   : > { %p187_p1 = scmp.lt.s32.totalorder %s2492_s18, 5 }
   0x4   : > { %p188_p2 = pnand %p2053_p0, %p187_p1 }
   0x6   : > { %191 = sbr.rel (%p188_p2) target bundleno = 1012 (0x3f4), region = 40 }
   0xb   : > { %p215_p3 = scmp.lt.s32.totalorder %s2049_s19, 3  ;;  %s2494_s24 = smov 110   ;;  %vm348_vm0 = vcmask 900096   ;;  %vm290_vm1 = vcmask 1039360   ;;  %v2502_v42 = vmov 0   ;;  %vm319_vm2 = vcmask 1031168  }
   0xc   : > { %s2495_s25 = smov 127   ;;  %s2496_s26 = smov 126   ;;  %2475 = vset.pattern.permute.xlu1 %v2502_v42  ;;  %2476 = vset.pattern.permute.xlu2 %v2502_v42  ;;  %v2092_v55 = vld [vmem:[%s3913_s1] sm:$0xf]  ;;  %v2382_v56 = vld [vmem:[%s3913_s1 + $0x10] sm:$0xf0] }
   0xd   : > { %s4073_s19 = smov (!%p215_p3, %s2049_s19), 3  ;;  %s2497_s27 = smov 108   ;;  %2477 = vset.pattern.permute.xlu0 %v2502_v42  ;;  %v2741_v61 = vor.u32 %v2382_v56, %v2092_v55  ;;  %v592_v62 = vld [vmem:[%s3914_s2 + $0x70] sm:$0xff]  ;;  %v593_v63 = vld [vmem:[%s3914_s2 + $0x78] sm:$0xff]  ;;  %vm406_vm3 = vcmask 883712   ;;  %vm464_vm4 = vcmask 744448  }
   0xe   : > { %s2370_s20 = sshll.u32 %s4073_s19, 6  ;;  %s2498_s28 = smov 91   ;;  %v2425_v42 = vld [vmem:[%s3913_s1 + $0x16c] sm:$0xf]  ;;  %vm377_vm5 = vcmask 891904   ;;  %vm435_vm6 = vcmask 752640  }
   0xf   : > { %s2547_s23 = scalar_lea.vmem %s3912_s0, %s2370_s20  ;;  %s2499_s29 = smov 109   ;;  %vm493_vm7 = vcmask 736256   ;;  %vm1022_vm8 = vcmask 523264   ;;  %vm1992_vm13 = vcmask 125952  }
  0x10   : > { %v2084_v0 = vld [vmem:[%s2547_s23 + $0x30] sm:$0xf]  ;;  %v2379_v1 = vld [vmem:[%s2547_s23 + $0x34] sm:$0xf0]  ;;  %v2076_v3 = vld [vmem:[%s2547_s23 + $0x20] sm:$0xf] }
  0x11   : > { %v2551_v2 = vor.u32 %v2379_v1, %v2084_v0  ;;  %v2377_v4 = vld [vmem:[%s2547_s23 + $0x24] sm:$0xf0]  ;;  %v2378_v6 = vld [vmem:[%s2547_s23 + $0x34] sm:$0xf]  ;;  %v2086_v7 = vld [vmem:[%s2547_s23 + $0x38] sm:$0xf0] }
  0x12   : > { %v2555_v5 = vor.u32 %v2377_v4, %v2076_v3  ;;  %v2376_v8 = vld [vmem:[%s2547_s23 + $0x24] sm:$0xf]  ;;  %v2078_v9 = vld [vmem:[%s2547_s23 + $0x28] sm:$0xf0]  ;;  %v2567_v10 = vor.u32 %v2378_v6, %v2086_v7  ;;  %v2068_v12 = vld [vmem:[%s2547_s23 + $0x10] sm:$0xf] }
  0x13   : > { %344 = vrot.lane.b32.xlu1 %v2551_v2, %s2494_s24  ;;  %286 = vrot.lane.b32.xlu0 %v2551_v2, %s2495_s25  ;;  %v2569_v11 = vor.u32 %v2376_v8, %v2078_v9  ;;  %v2375_v13 = vld [vmem:[%s2547_s23 + $0x14] sm:$0xf0]  ;;  %v2374_v15 = vld [vmem:[%s2547_s23 + $0x14] sm:$0xf]  ;;  %s2500_s30 = smov 92   ;;  %s2501_s6 = smov 90  }
  0x14   : > { %282 = vrot.lane.b32.xlu2 %v2555_v5, %s2495_s25  ;;  %v2579_v14 = vor.u32 %v2375_v13, %v2068_v12  ;;  %v2070_v16 = vld [vmem:[%s2547_s23 + $0x18] sm:$0xf0]  ;;  %v2060_v18 = vld [vmem:[%s2547_s23] sm:$0xf]  ;;  %v2373_v19 = vld [vmem:[%s2547_s23 + $0x4] sm:$0xf0] }
  0x15   : > { %v2589_v17 = vor.u32 %v2374_v15, %v2070_v16  ;;  %v2372_v20 = vld [vmem:[%s2547_s23 + $0x4] sm:$0xf]  ;;  %v2062_v21 = vld [vmem:[%s2547_s23 + $0x8] sm:$0xf0]  ;;  %v2601_v22 = vor.u32 %v2373_v19, %v2060_v18  ;;  %v2094_v4 = vld [vmem:[%s3913_s1 + $0x14] sm:$0xf0] }
  0x16   : > { %v2603_v23 = vor.u32 %v2372_v20, %v2062_v21  ;;  %v2380_v3 = vld [vmem:[%s3913_s1 + $0x4] sm:$0xf]  ;;  %v2254_v7 = vld [vmem:[%s3913_s1 + $0x154] sm:$0xf0]  ;;  %v2252_v8 = vld [vmem:[%s3913_s1 + $0x140] sm:$0xf] }
  0x17   : > { %v2420_v6 = vld [vmem:[%s3913_s1 + $0x144] sm:$0xf]  ;;  %v2422_v9 = vld [vmem:[%s3913_s1 + $0x150] sm:$0xf0]  ;;  %v2785_v15 = vor.u32 %v2380_v3, %v2094_v4  ;;  %v591_v18 = vld [vmem:[%s3914_s2 + $0x68] sm:$0xff]  ;;  %s2371_s8 = sshll.u32 %s4073_s19, 5 }
  0x18   : > { %v2780_v13 = vor.u32 %v2422_v9, %v2252_v8  ;;  %v2787_v16 = vor.u32 %v2420_v6, %v2254_v7  ;;  %v2112_v19 = vld [vmem:[%s3913_s1 + $0x28] sm:$0xf]  ;;  %v2387_v20 = vld [vmem:[%s3913_s1 + $0x38] sm:$0xf0]  ;;  %v588_v21 = vld [vmem:[%s3914_s2 + $0x50] sm:$0xff]  ;;  %s3894_s11 = scalar_lea.vmem %s3917_s5, %s2371_s8 }
  0x19   : > { %v2134_v7 = vld [vmem:[%s3913_s1 + $0x64] sm:$0xf0]  ;;  %v2430_v9 = vld [vmem:[%s3913_s1 + $0x194] sm:$0xf] }
  0x1a   : > { %3960 = vst [vmem:[#allocation2_spill] sm:$0xff] %v2787_v16 }
  0x1b   : > { %346 = vrot.lane.b32.xlu1 %v2567_v10, %s2494_s24  ;;  %288 = vrot.lane.b32.xlu0 %v2567_v10, %s2495_s25 }
  0x1c   : > { %284 = vrot.lane.b32.xlu2 %v2569_v11, %s2495_s25 }
  0x23   : > { %340 = vrot.lane.b32.xlu0 %v2555_v5, %s2494_s24  ;;  %342 = vrot.lane.b32.xlu1 %v2569_v11, %s2494_s24 }
  0x24   : > { %278 = vrot.lane.b32.xlu2 %v2579_v14, %s2495_s25 }
  0x2b   : > { %336 = vrot.lane.b32.xlu1 %v2579_v14, %s2494_s24  ;;  %280 = vrot.lane.b32.xlu0 %v2589_v17, %s2495_s25 }
  0x2c   : > { %338 = vrot.lane.b32.xlu2 %v2589_v17, %s2494_s24 }
  0x33   : > { %274 = vrot.lane.b32.xlu0 %v2601_v22, %s2495_s25  ;;  %276 = vrot.lane.b32.xlu1 %v2603_v23, %s2495_s25 }
  0x34   : > { %332 = vrot.lane.b32.xlu2 %v2601_v22, %s2494_s24 }
  0x3b   : > { %334 = vrot.lane.b32.xlu0 %v2603_v23, %s2494_s24  ;;  %315 = vrot.lane.b32.xlu1 %v2551_v2, %s2496_s26 }
  0x3c   : > { %317 = vrot.lane.b32.xlu2 %v2567_v10, %s2496_s26 }
  0x43   : > { %311 = vrot.lane.b32.xlu0 %v2555_v5, %s2496_s26  ;;  %313 = vrot.lane.b32.xlu1 %v2569_v11, %s2496_s26 }
  0x44   : > { %307 = vrot.lane.b32.xlu2 %v2579_v14, %s2496_s26 }
  0x4b   : > { %309 = vrot.lane.b32.xlu0 %v2589_v17, %s2496_s26  ;;  %303 = vrot.lane.b32.xlu1 %v2601_v22, %s2496_s26 }
  0x4c   : > { %305 = vrot.lane.b32.xlu2 %v2603_v23, %s2496_s26 }
  0x53   : > { %402 = vrot.lane.b32.xlu0 %v2551_v2, %s2497_s27  ;;  %404 = vrot.lane.b32.xlu1 %v2567_v10, %s2497_s27 }
  0x54   : > { %460 = vrot.lane.b32.xlu2 %v2551_v2, %s2498_s28 }
  0x5b   : > { %462 = vrot.lane.b32.xlu0 %v2567_v10, %s2498_s28  ;;  %398 = vrot.lane.b32.xlu1 %v2555_v5, %s2497_s27 }
  0x5c   : > { %400 = vrot.lane.b32.xlu2 %v2569_v11, %s2497_s27 }
  0x63   : > { %456 = vrot.lane.b32.xlu0 %v2555_v5, %s2498_s28  ;;  %458 = vrot.lane.b32.xlu1 %v2569_v11, %s2498_s28 }
  0x64   : > { %394 = vrot.lane.b32.xlu2 %v2579_v14, %s2497_s27 }
  0x6b   : > { %396 = vrot.lane.b32.xlu0 %v2589_v17, %s2497_s27  ;;  %452 = vrot.lane.b32.xlu1 %v2579_v14, %s2498_s28 }
  0x6c   : > { %454 = vrot.lane.b32.xlu2 %v2589_v17, %s2498_s28 }
  0x6e   : > { %v283_v24 = vpop.permute.xlu2 %282 }
  0x73   : > { %390 = vrot.lane.b32.xlu0 %v2601_v22, %s2497_s27  ;;  %392 = vrot.lane.b32.xlu1 %v2603_v23, %s2497_s27 }
  0x74   : > { %448 = vrot.lane.b32.xlu2 %v2601_v22, %s2498_s28 }
  0x76   : > { %v2636_v25 = vpop.permute.xlu2 %284 }
  0x77   : > { %v293_v35 = vsel %vm290_vm1, %v283_v24, %v2636_v25 }
  0x7b   : > { %450 = vrot.lane.b32.xlu0 %v2603_v23, %s2498_s28  ;;  %373 = vrot.lane.b32.xlu1 %v2551_v2, %s2499_s29 }
  0x7c   : > { %375 = vrot.lane.b32.xlu2 %v2567_v10, %s2499_s29 }
  0x7e   : > { %v279_v26 = vpop.permute.xlu2 %278 }
  0x83   : > { %431 = vrot.lane.b32.xlu0 %v2551_v2, %s2500_s30  ;;  %433 = vrot.lane.b32.xlu1 %v2567_v10, %s2500_s30 }
  0x84   : > { %369 = vrot.lane.b32.xlu2 %v2555_v5, %s2499_s29 }
  0x85   : > { %v345_v27 = vpop.permute.xlu1 %344  ;;  %v287_v28 = vpop.permute.xlu0 %286 }
  0x86   : > { %v2649_v29 = vpop.permute.xlu2 %338 }
  0x8b   : > { %371 = vrot.lane.b32.xlu0 %v2569_v11, %s2499_s29  ;;  %427 = vrot.lane.b32.xlu1 %v2555_v5, %s2500_s30 }
  0x8c   : > { %429 = vrot.lane.b32.xlu2 %v2569_v11, %s2500_s30 }
  0x8d   : > { %v2657_v30 = vpop.permute.xlu1 %346  ;;  %v2659_v31 = vpop.permute.xlu0 %288 }
  0x8e   : > { %v294_v32 = vsel %vm290_vm1, %v287_v28, %v2659_v31  ;;  %v352_v33 = vsel %vm348_vm0, %v345_v27, %v2657_v30  ;;  %v333_v34 = vpop.permute.xlu2 %332  ;;  %v2811_v28 = vor.u32 %v2387_v20, %v2112_v19  ;;  %v580_v19 = vld [vmem:[%s3914_s2 + $0x10] sm:$0xff] }
  0x8f   : > { %1059 = vmatpush.bf16.msra.mxu0 %v294_v32  ;;  %2442 = vmatpush.bf16.msra.mxu3 %v294_v32  ;;  %v589_v32 = vld [vmem:[%s3914_s2 + $0x58] sm:$0xff] }
  0x90   : > { %1128 = vmatpush.bf16.msra.mxu1 %v352_v33  ;;  %2450 = vmatpush.bf16.msra.mxu2 %v352_v33 }
  0x93   : > { %1060 = vmatpush.bf16.msra.mxu0 %v293_v35  ;;  %2443 = vmatpush.bf16.msra.mxu3 %v293_v35 }
  0x94   : > { %365 = vrot.lane.b32.xlu0 %v2579_v14, %s2499_s29  ;;  %367 = vrot.lane.b32.xlu1 %v2589_v17, %s2499_s29 }
  0x95   : > { %v341_v36 = vpop.permute.xlu0 %340  ;;  %v2671_v37 = vpop.permute.xlu1 %342  ;;  %423 = vrot.lane.b32.xlu2 %v2579_v14, %s2500_s30 }
  0x96   : > { %v351_v38 = vsel %vm348_vm0, %v341_v36, %v2671_v37  ;;  %v2677_v39 = vpop.permute.xlu2 %317 }
  0x97   : > { %1129 = vmatpush.bf16.msra.mxu1 %v351_v38  ;;  %2451 = vmatpush.bf16.msra.mxu2 %v351_v38  ;;  %v2385_v38 = vld [vmem:[%s3913_s1 + $0x2c] sm:$0xf] }
  0x9c   : > { %425 = vrot.lane.b32.xlu0 %v2589_v17, %s2500_s30  ;;  %489 = vrot.lane.b32.xlu1 %v2551_v2, %s2501_s6 }
  0x9d   : > { %v337_v40 = vpop.permute.xlu1 %336  ;;  %v2683_v41 = vpop.permute.xlu0 %280  ;;  %491 = vrot.lane.b32.xlu2 %v2567_v10, %s2501_s6 }
  0x9e   : > { %v292_v43 = vsel %vm290_vm1, %v279_v26, %v2683_v41  ;;  %v350_v44 = vsel %vm348_vm0, %v337_v40, %v2649_v29  ;;  %v308_v45 = vpop.permute.xlu2 %307  ;;  %v2114_v40 = vld [vmem:[%s3913_s1 + $0x3c] sm:$0xf0] }
  0x9f   : > { %1061 = vmatpush.bf16.msra.mxu0 %v292_v43  ;;  %2444 = vmatpush.bf16.msra.mxu3 %v292_v43  ;;  %v2274_v43 = vld [vmem:[%s3913_s1 + $0x17c] sm:$0xf0] }
  0xa0   : > { %1130 = vmatpush.bf16.msra.mxu1 %v350_v44  ;;  %2452 = vmatpush.bf16.msra.mxu2 %v350_v44  ;;  %v2272_v44 = vld [vmem:[%s3913_s1 + $0x168] sm:$0xf] }
  0xa4   : > { %361 = vrot.lane.b32.xlu0 %v2601_v22, %s2499_s29  ;;  %363 = vrot.lane.b32.xlu1 %v2603_v23, %s2499_s29 }
  0xa5   : > { %v275_v46 = vpop.permute.xlu0 %274  ;;  %v2695_v47 = vpop.permute.xlu1 %276  ;;  %419 = vrot.lane.b32.xlu2 %v2601_v22, %s2500_s30 }
  0xa6   : > { %v291_v48 = vsel %vm290_vm1, %v275_v46, %v2695_v47  ;;  %v2701_v49 = vpop.permute.xlu2 %305  ;;  %vm1989_vm1 = vcmask 130048  }
  0xa7   : > { %1062 = vmatpush.bf16.msra.mxu0 %v291_v48  ;;  %2445 = vmatpush.bf16.msra.mxu3 %v291_v48  ;;  %v600_v48 = vld [vmem:[%s3914_s2 + $0xb0] sm:$0xff] }
  0xab   : > { %1063 = vmatpush.bf16.msra.mxu0 %v2551_v2  ;;  %2446 = vmatpush.bf16.msra.mxu3 %v2551_v2 }
  0xac   : > { %421 = vrot.lane.b32.xlu0 %v2603_v23, %s2500_s30  ;;  %485 = vrot.lane.b32.xlu1 %v2555_v5, %s2501_s6 }
  0xad   : > { %v2709_v50 = vpop.permute.xlu0 %334  ;;  %v316_v51 = vpop.permute.xlu1 %315  ;;  %487 = vrot.lane.b32.xlu2 %v2569_v11, %s2501_s6 }
  0xae   : > { %v349_v52 = vsel %vm348_vm0, %v333_v34, %v2709_v50  ;;  %v2715_v53 = vpop.permute.xlu2 %460  ;;  %v323_v54 = vsel %vm319_vm2, %v316_v51, %v2677_v39  ;;  %v2858_v51 = vor.u32 %v2385_v38, %v2114_v40  ;;  %v597_v38 = vld [vmem:[%s3914_s2 + $0x98] sm:$0xff] }
  0xaf   : > { %1131 = vmatpush.bf16.msra.mxu1 %v349_v52  ;;  %2453 = vmatpush.bf16.msra.mxu2 %v349_v52  ;;  %v2860_v52 = vor.u32 %v2425_v42, %v2274_v43  ;;  %v581_v40 = vld [vmem:[%s3914_s2 + $0x18] sm:$0xff] }
  0xb0   : > { %1064 = vmatpush.bf16.msra.mxu0 %v2555_v5  ;;  %2447 = vmatpush.bf16.msra.mxu3 %v2555_v5 }
  0xb1   : > { %3961 = vst [vmem:[#allocation3_spill] sm:$0xff] %v2860_v52 }
  0xb3   : > { %1132 = vmatpush.bf16.msra.mxu1 %v323_v54  ;;  %2454 = vmatpush.bf16.msra.mxu2 %v323_v54  ;;  %v2392_v54 = vld [vmem:[%s3913_s1 + $0x60] sm:$0xf0] }
  0xb4   : > { %481 = vrot.lane.b32.xlu0 %v2579_v14, %s2501_s6  ;;  %1065 = vmatpush.bf16.msra.mxu0 %v2579_v14 }
  0xb5   : > { %v312_v57 = vpop.permute.xlu0 %311  ;;  %v2730_v58 = vpop.permute.xlu1 %313  ;;  %483 = vrot.lane.b32.xlu1 %v2589_v17, %s2501_s6  ;;  %2448 = vmatpush.bf16.msra.mxu3 %v2579_v14  ;;  %v590_v14 = vld [vmem:[%s3914_s2 + $0x60] sm:$0xff] }
  0xb6   : > { %v322_v59 = vsel %vm319_vm2, %v312_v57, %v2730_v58  ;;  %v2737_v60 = vpop.permute.xlu2 %400  ;;  %477 = vrot.lane.b32.xlu2 %v2601_v22, %s2501_s6  ;;  %v585_v57 = vld [vmem:[%s3914_s2 + $0x38] sm:$0xff] }
  0xb7   : > { %1133 = vmatpush.bf16.msra.mxu1 %v322_v59  ;;  %2455 = vmatpush.bf16.msra.mxu2 %v322_v59 }
  0xb8   : > { %1066 = vmatpush.bf16.msra.mxu0 %v2601_v22 }
  0xb9   : > { %2449 = vmatpush.bf16.msra.mxu3 %v2601_v22 }
  0xbb   : > { %1067 = vmatmul.bf16.vlgmr.msra.gmra.mxu0 %v2741_v61 }
  0xbc   : > { %479 = vrot.lane.b32.xlu0 %v2603_v23, %s2501_s6  ;;  %1107 = vmatmul.bf16.vlgmr.msra.gmra.mxu3 %v2780_v13 }
  0xbd   : > { %v2754_v0 = vpop.permute.xlu0 %309  ;;  %v304_v1 = vpop.permute.xlu1 %303  ;;  %674 = vperm.xlu1 %2475, %v592_v62  }
  0xbe   : > { %v321_v2 = vsel %vm319_vm2, %v308_v45, %v2754_v0  ;;  %v2764_v5 = vpop.permute.xlu2 %394  ;;  %679 = vperm.xlu2 %2476, %v593_v63   ;;  %v320_v12 = vsel %vm319_vm2, %v304_v1, %v2701_v49  ;;  %v2427_v45 = vld [vmem:[%s3913_s1 + $0x178] sm:$0xf0]  ;;  %v583_v63 = vld [vmem:[%s3914_s2 + $0x28] sm:$0xff] }
  0xbf   : > { %1134 = vmatpush.bf16.msra.mxu1 %v321_v2  ;;  %2456 = vmatpush.bf16.msra.mxu2 %v321_v2  ;;  %v2853_v46 = vor.u32 %v2427_v45, %v2272_v44  ;;  %v601_v1 = vld [vmem:[%s3914_s2 + $0xb8] sm:$0xff]  ;;  %v596_v44 = vld [vmem:[%s3914_s2 + $0x90] sm:$0xff] }
  0xc3   : > { %1135 = vmatpush.bf16.msra.mxu1 %v320_v12  ;;  %2457 = vmatpush.bf16.msra.mxu2 %v320_v12  ;;  %v2292_v12 = vld [vmem:[%s3913_s1 + $0x190] sm:$0xf] }
  0xc4   : > { %664 = vperm.xlu0 %2477, %v590_v14   ;;  %v2432_v14 = vld [vmem:[%s3913_s1 + $0x1a0] sm:$0xf0] }
  0xc5   : > { %v403_v22 = vpop.permute.xlu0 %402  ;;  %v2803_v24 = vpop.permute.xlu1 %404  ;;  %669 = vperm.xlu1 %2475, %v591_v18   ;;  %v2925_v18 = vor.u32 %v2432_v14, %v2292_v12 }
  0xc6   : > { %1136 = vmatmul.bf16.vlgmr.msra.gmra.mxu1 %v2785_v15  ;;  %v410_v26 = vsel %vm406_vm3, %v403_v22, %v2803_v24  ;;  %1176 = vmatmul.bf16.vlgmr.msra.gmra.mxu2 %v2787_v16  ;;  %v2809_v27 = vpop.permute.xlu2 %454  ;;  %v598_v22 = vld [vmem:[%s3914_s2 + $0xa0] sm:$0xff] }
  0xc7   : > { %1404 = vmatpush.bf16.msrb.mxu1 %v2659_v31  ;;  %1197 = vmatpush.bf16.msrb.mxu2 %v410_v26  ;;  %v587_v31 = vld [vmem:[%s3914_s2 + $0x48] sm:$0xff]  ;;  %v2152_v26 = vld [vmem:[%s3913_s1 + $0x78] sm:$0xf] }
  0xc8   : > { %654 = vperm.xlu2 %2476, %v588_v21  }
  0xcb   : > { %1405 = vmatpush.bf16.msrb.mxu1 %v2636_v25  ;;  %1072 = vmatmul.bf16.gmra.mxu0 %v2811_v28  ;;  %v586_v25 = vld [vmem:[%s3914_s2 + $0x40] sm:$0xff] }
  0xcc   : > { %649 = vperm.xlu0 %2477, %v587_v31   ;;  %1112 = vmatmul.bf16.gmra.mxu3 %v2853_v46 }
  0xcd   : > { %v2822_v33 = vpop.permute.xlu0 %462  ;;  %v399_v34 = vpop.permute.xlu1 %398  ;;  %659 = vperm.xlu1 %2475, %v589_v32  }
  0xce   : > { %v409_v35 = vsel %vm406_vm3, %v399_v34, %v2737_v60  ;;  %v468_v36 = vsel %vm464_vm4, %v2715_v53, %v2822_v33  ;;  %v584_v53 = vld [vmem:[%s3914_s2 + $0x30] sm:$0xff]  ;;  %v599_v34 = vld [vmem:[%s3914_s2 + $0xa8] sm:$0xff] }
  0xcf   : > { %1406 = vmatpush.bf16.msrb.mxu1 %v2683_v41  ;;  %v2838_v41 = vpop.permute.xlu2 %448  ;;  %1198 = vmatpush.bf16.msrb.mxu2 %v409_v35 }
  0xd0   : > { %1266 = vmatpush.bf16.msrb.mxu3 %v468_v36  ;;  %644 = vperm.xlu2 %2476, %v586_v25  }
  0xd3   : > { %1407 = vmatpush.bf16.msrb.mxu1 %v2695_v47  ;;  %v2132_v47 = vld [vmem:[%s3913_s1 + $0x50] sm:$0xf] }
  0xd4   : > { %714 = vperm.xlu0 %2477, %v600_v48  }
  0xd5   : > { %v457_v55 = vpop.permute.xlu0 %456  ;;  %v2873_v56 = vpop.permute.xlu1 %458  ;;  %634 = vperm.xlu1 %2475, %v584_v53   ;;  %v2395_v53 = vld [vmem:[%s3913_s1 + $0x7c] sm:$0xf] }
  0xd6   : > { %1141 = vmatmul.bf16.gmra.mxu1 %v2858_v51  ;;  %v467_v59 = vsel %vm464_vm4, %v457_v55, %v2873_v56  ;;  %1181 = vmatmul.bf16.gmra.mxu2 %v2860_v52  ;;  %v2435_v55 = vld [vmem:[%s3913_s1 + $0x1bc] sm:$0xf] }
  0xd7   : > { %1408 = vmatpush.bf16.msrb.mxu1 %v2567_v10  ;;  %v2882_v62 = vpop.permute.xlu2 %375  ;;  %1267 = vmatpush.bf16.msrb.mxu3 %v467_v59  ;;  %v2884_v10 = vor.u32 %v2392_v54, %v2132_v47  ;;  %v2154_v47 = vld [vmem:[%s3913_s1 + $0x8c] sm:$0xf0]  ;;  %v2437_v59 = vld [vmem:[%s3913_s1 + $0x1c8] sm:$0xf0] }
  0xd8   : > { %639 = vperm.xlu2 %2476, %v585_v57   ;;  %v2314_v57 = vld [vmem:[%s3913_s1 + $0x1cc] sm:$0xf0] }
  0xdb   : > { %1409 = vmatpush.bf16.msrb.mxu1 %v2569_v11  ;;  %1077 = vmatmul.bf16.gmra.mxu0 %v2884_v10  ;;  %v582_v11 = vld [vmem:[%s3914_s2 + $0x20] sm:$0xff] }
  0xdc   : > { %629 = vperm.xlu0 %2477, %v583_v63   ;;  %1117 = vmatmul.bf16.gmra.mxu3 %v2925_v18 }
  0xdd   : > { %v2895_v2 = vpop.permute.xlu0 %396  ;;  %v453_v3 = vpop.permute.xlu1 %452  ;;  %719 = vperm.xlu1 %2475, %v601_v1   ;;  %v594_v1 = vld [vmem:[%s3914_s2 + $0x80] sm:$0xff] }
  0xde   : > { %v408_v4 = vsel %vm406_vm3, %v2764_v5, %v2895_v2  ;;  %v466_v6 = vsel %vm464_vm4, %v453_v3, %v2809_v27  ;;  %v2294_v5 = vld [vmem:[%s3913_s1 + $0x1a4] sm:$0xf0]  ;;  %v2998_v3 = vor.u32 %v2395_v53, %v2154_v47 }
  0xdf   : > { %1410 = vmatpush.bf16.msrb.mxu1 %v2589_v17  ;;  %v2390_v17 = vld [vmem:[%s3913_s1 + $0x54] sm:$0xf]  ;;  %v2911_v8 = vpop.permute.xlu2 %369  ;;  %1199 = vmatpush.bf16.msrb.mxu2 %v408_v4  ;;  %v2933_v21 = vor.u32 %v2430_v9, %v2294_v5  ;;  %v578_v4 = vld [vmem:[%s3914_s2] sm:$0xff]  ;;  %v579_v5 = vld [vmem:[%s3914_s2 + $0x8] sm:$0xff] }
  0xe0   : > { %1268 = vmatpush.bf16.msrb.mxu3 %v466_v6  ;;  %624 = vperm.xlu2 %2476, %v582_v11   ;;  %v2931_v20 = vor.u32 %v2390_v17, %v2134_v7  ;;  %v3000_v11 = vor.u32 %v2435_v55, %v2314_v57  ;;  %v2172_v6 = vld [vmem:[%s3913_s1 + $0xa0] sm:$0xf]  ;;  %v2402_v17 = vld [vmem:[%s3913_s1 + $0xb0] sm:$0xf0] }
  0xe1   : > { %3962 = vst [vmem:[#allocation4_spill] sm:$0xff] %v2933_v21  ;;  %v3021_v14 = vor.u32 %v2402_v17, %v2172_v6  ;;  %v2194_v6 = vld [vmem:[%s3913_s1 + $0xdc] sm:$0xf0] }
  0xe2   : > { %3963 = vst [vmem:[#allocation5_spill] sm:$0xff] %v3000_v11 }
  0xe3   : > { %1411 = vmatpush.bf16.msrb.mxu1 %v2603_v23  ;;  %v2397_v23 = vld [vmem:[%s3913_s1 + $0x88] sm:$0xf0] }
  0xe4   : > { %614 = vperm.xlu0 %2477, %v580_v19   ;;  %v2956_v36 = vor.u32 %v2397_v23, %v2152_v26 }
  0xe5   : > { %v391_v31 = vpop.permute.xlu0 %390  ;;  %v2945_v32 = vpop.permute.xlu1 %392  ;;  %704 = vperm.xlu1 %2475, %v598_v22   ;;  %v595_v22 = vld [vmem:[%s3914_s2 + $0x88] sm:$0xff] }
  0xe6   : > { %1146 = vmatmul.bf16.gmra.mxu1 %v2931_v20  ;;  %v407_v25 = vsel %vm406_vm3, %v391_v31, %v2945_v32  ;;  %1186 = vmatmul.bf16.gmra.mxu2 %v2933_v21 }
  0xe7   : > { %v2954_v35 = vpop.permute.xlu2 %429  ;;  %1200 = vmatpush.bf16.msrb.mxu2 %v407_v25  ;;  %v2400_v25 = vld [vmem:[%s3913_s1 + $0xa4] sm:$0xf] }
  0xe8   : > { %709 = vperm.xlu2 %2476, %v599_v34  }
  0xeb   : > { %1082 = vmatmul.bf16.gmra.mxu0 %v2956_v36 }
  0xec   : > { %699 = vperm.xlu0 %2477, %v597_v38   ;;  %v2174_v38 = vld [vmem:[%s3913_s1 + $0xb4] sm:$0xf0] }
  0xed   : > { %v2965_v42 = vpop.permute.xlu0 %450  ;;  %v374_v43 = vpop.permute.xlu1 %373  ;;  %619 = vperm.xlu1 %2475, %v581_v40  }
  0xee   : > { %v381_v45 = vsel %vm377_vm5, %v374_v43, %v2882_v62  ;;  %v465_v48 = vsel %vm464_vm4, %v2838_v41, %v2965_v42  ;;  %v2312_v41 = vld [vmem:[%s3913_s1 + $0x1b8] sm:$0xf]  ;;  %v3040_v43 = vor.u32 %v2400_v25, %v2174_v38 }
  0xef   : > { %1201 = vmatpush.bf16.msrb.mxu2 %v381_v45  ;;  %1269 = vmatpush.bf16.msrb.mxu3 %v465_v48  ;;  %v424_v54 = vpop.permute.xlu2 %423  ;;  %v2993_v63 = vor.u32 %v2437_v59, %v2312_v41 }
  0xf0   : > { %694 = vperm.xlu2 %2476, %v596_v44   ;;  %v2407_v44 = vld [vmem:[%s3913_s1 + $0xd8] sm:$0xf0] }
  0xf1   : > { %1122 = vmatmul.bf16.gmra.mxu3 %v2993_v63 }
  0xf4   : > { %684 = vperm.xlu0 %2477, %v594_v1  }
  0xf5   : > { %v432_v7 = vpop.permute.xlu0 %431  ;;  %v3012_v9 = vpop.permute.xlu1 %433  ;;  %604 = vperm.xlu1 %2475, %v578_v4   ;;  %v2405_v4 = vld [vmem:[%s3913_s1 + $0xcc] sm:$0xf] }
  0xf6   : > { %1151 = vmatmul.bf16.gmra.mxu1 %v2998_v3  ;;  %v439_v12 = vsel %vm435_vm6, %v432_v7, %v3012_v9  ;;  %1191 = vmatmul.bf16.gmra.mxu2 %v3000_v11  ;;  %v3067_v7 = vor.u32 %v2405_v4, %v2194_v6  ;;  %v2232_v6 = vld [vmem:[%s3913_s1 + $0x118] sm:$0xf] }
  0xf7   : > { %1270 = vmatpush.bf16.msrb.mxu3 %v439_v12  ;;  %v492_v19 = vpop.permute.xlu2 %491  ;;  %v2100_v12 = vld [vmem:[%s3913_s1 + $0x8] sm:$0xf] }
  0xf8   : > { %1684 = vmatpush.bf16.msra.mxu1 %v492_v19  ;;  %609 = vperm.xlu2 %2476, %v579_v5   ;;  %3964 = vst [vmem:[#allocation6_spill] sm:$0xff] %v3067_v7  ;;  %v2212_v5 = vld [vmem:[%s3913_s1 + $0xf0] sm:$0xf] }
  0xfb   : > { %1087 = vmatmul.bf16.gmra.mxu0 %v3021_v14 }
  0xfd   : > { %v3027_v26 = vpop.permute.xlu0 %371  ;;  %v428_v23 = vpop.permute.xlu1 %427  ;;  %689 = vperm.xlu1 %2475, %v595_v22  }
  0xfe   : > { %v380_v31 = vsel %vm377_vm5, %v2911_v8, %v3027_v26  ;;  %v438_v34 = vsel %vm435_vm6, %v428_v23, %v2954_v35  ;;  %v2192_v8 = vld [vmem:[%s3913_s1 + $0xc8] sm:$0xf] }
  0xff   : > { %1202 = vmatpush.bf16.msrb.mxu2 %v380_v31  ;;  %1271 = vmatpush.bf16.msrb.mxu3 %v438_v34  ;;  %v420_v40 = vpop.permute.xlu2 %419  ;;  %v3053_v47 = vor.u32 %v2407_v44, %v2192_v8  ;;  %v2381_v8 = vld [vmem:[%s3913_s1 + $0xc] sm:$0xf]  ;;  %v2102_v44 = vld [vmem:[%s3913_s1 + $0x1c] sm:$0xf0] }
 0x106   : > { %v366_v45 = vpop.permute.xlu0 %365  ;;  %v3048_v48 = vpop.permute.xlu1 %367  ;;  %1156 = vmatmul.bf16.gmra.mxu1 %v3040_v43 }
 0x107   : > { %v379_v53 = vsel %vm377_vm5, %v366_v45, %v3048_v48  ;;  %v488_v55 = vpop.permute.xlu2 %487 }
 0x108   : > { %1203 = vmatpush.bf16.msrb.mxu2 %v379_v53  ;;  %1685 = vmatpush.bf16.msra.mxu1 %v488_v55 }
 0x10b   : > { %1092 = vmatmul.bf16.gmra.mxu0 %v3053_v47 }
 0x10e   : > { %v3056_v57 = vpop.permute.xlu0 %425  ;;  %v490_v41 = vpop.permute.xlu1 %489 }
 0x10f   : > { %v437_v59 = vsel %vm435_vm6, %v424_v54, %v3056_v57  ;;  %v497_v1 = vsel %vm493_vm7, %v490_v41, %v492_v19  ;;  %v2412_v54 = vld [vmem:[%s3913_s1 + $0x100] sm:$0xf0]  ;;  %v2383_v19 = vld [vmem:[%s3913_s1 + $0x18] sm:$0xf0]  ;;  %v3106_v41 = vor.u32 %v2381_v8, %v2102_v44 }
 0x110   : > { %1272 = vmatpush.bf16.msrb.mxu3 %v437_v59  ;;  %1339 = vmatpush.bf16.msrb.mxu0 %v497_v1  ;;  %v478_v17 = vpop.permute.xlu2 %477  ;;  %v3086_v34 = vor.u32 %v2412_v54, %v2212_v5  ;;  %v3088_v25 = vor.u32 %v2383_v19, %v2100_v12  ;;  %v2410_v59 = vld [vmem:[%s3913_s1 + $0xf4] sm:$0xf]  ;;  %v2214_v1 = vld [vmem:[%s3913_s1 + $0x104] sm:$0xf0]  ;;  %v2415_v44 = vld [vmem:[%s3913_s1 + $0x11c] sm:$0xf] }
 0x116   : > { %v362_v22 = vpop.permute.xlu0 %361  ;;  %v3081_v23 = vpop.permute.xlu1 %363  ;;  %1161 = vmatmul.bf16.gmra.mxu1 %v3067_v7  ;;  %v2200_v7 = vld [vmem:[%s3913_s1 + $0xd0] sm:$0xf] }
 0x117   : > { %v378_v31 = vsel %vm377_vm5, %v362_v22, %v3081_v23 }
 0x118   : > { %1204 = vmatpush.bf16.msrb.mxu2 %v378_v31  ;;  %v3090_v38 = vpop.permute.xlu2 %679 }
 0x119   : > { %3965 = vst [vmem:[#allocation7_spill] sm:$0xff] %v3090_v38 }
 0x11b   : > { %1097 = vmatmul.bf16.gmra.mxu0 %v3086_v34  ;;  %1205 = vmatmul.bf16.vlgmr.msrb.gmra.mxu2 %v3088_v25 }
 0x11c   : > { %1473 = vmatpush.bf16.msra.mxu2 %v2657_v30 }
 0x11e   : > { %v3102_v45 = vpop.permute.xlu0 %421  ;;  %v486_v53 = vpop.permute.xlu1 %485 }
 0x11f   : > { %v436_v30 = vsel %vm435_vm6, %v420_v40, %v3102_v45  ;;  %v496_v4 = vsel %vm493_vm7, %v486_v53, %v488_v55  ;;  %v3119_v40 = vor.u32 %v2410_v59, %v2214_v1  ;;  %v2417_v55 = vld [vmem:[%s3913_s1 + $0x128] sm:$0xf0]  ;;  %v2234_v53 = vld [vmem:[%s3913_s1 + $0x12c] sm:$0xf0] }
 0x120   : > { %1474 = vmatpush.bf16.msra.mxu2 %v2671_v37  ;;  %1273 = vmatpush.bf16.msrb.mxu3 %v436_v30  ;;  %v3137_v12 = vor.u32 %v2417_v55, %v2232_v6  ;;  %v2393_v59 = vld [vmem:[%s3913_s1 + $0x68] sm:$0xf0] }
 0x121   : > { %1340 = vmatpush.bf16.msrb.mxu0 %v496_v4  ;;  %3967 = vst [vmem:[#allocation9_spill] sm:$0xff] %v3119_v40 }
 0x122   : > { %v3117_v37 = vpop.permute.xlu2 %654 }
 0x123   : > { %3966 = vst [vmem:[#allocation8_spill] sm:$0xff] %v3117_v37  ;;  %1274 = vmatmul.bf16.vlgmr.msrb.gmra.mxu3 %v3106_v41 }
 0x124   : > { %1475 = vmatpush.bf16.msra.mxu2 %v2649_v29  ;;  %1542 = vmatpush.bf16.msra.mxu3 %v2803_v24  ;;  %v2120_v29 = vld [vmem:[%s3913_s1 + $0x30] sm:$0xf]  ;;  %v2388_v24 = vld [vmem:[%s3913_s1 + $0x40] sm:$0xf0] }
 0x125   : > { %v3139_v19 = vor.u32 %v2388_v24, %v2120_v29 }
 0x126   : > { %v482_v5 = vpop.permute.xlu0 %481  ;;  %1166 = vmatmul.bf16.gmra.mxu1 %v3119_v40 }
 0x127   : > { %v484_v54 = vpop.permute.xlu1 %483 }
 0x128   : > { %1476 = vmatpush.bf16.msra.mxu2 %v2709_v50  ;;  %1543 = vmatpush.bf16.msra.mxu3 %v2737_v60  ;;  %v495_v22 = vsel %vm493_vm7, %v482_v5, %v484_v54  ;;  %v2386_v50 = vld [vmem:[%s3913_s1 + $0x34] sm:$0xf]  ;;  %v2122_v60 = vld [vmem:[%s3913_s1 + $0x44] sm:$0xf0] }
 0x129   : > { %1686 = vmatpush.bf16.msra.mxu1 %v484_v54  ;;  %1341 = vmatpush.bf16.msrb.mxu0 %v495_v22  ;;  %v3157_v8 = vor.u32 %v2386_v50, %v2122_v60  ;;  %v2128_v22 = vld [vmem:[%s3913_s1 + $0x38] sm:$0xf] }
 0x12a   : > { %v3144_v31 = vpop.permute.xlu2 %644 }
 0x12b   : > { %3968 = vst [vmem:[#allocation10_spill] sm:$0xff] %v3144_v31  ;;  %1102 = vmatmul.bf16.gmra.mxu0 %v3137_v12  ;;  %1210 = vmatmul.bf16.gmra.mxu2 %v3139_v19 }
 0x12c   : > { %1477 = vmatpush.bf16.msra.mxu2 %v2677_v39  ;;  %1544 = vmatpush.bf16.msra.mxu3 %v2895_v2 }
 0x12e   : > { %v480_v39 = vpop.permute.xlu0 %479 }
 0x12f   : > { %v494_v2 = vsel %vm493_vm7, %v478_v17, %v480_v39  ;;  %v3165_v30 = vpop.permute.xlu1 %674  ;;  %1687 = vmatpush.bf16.msra.mxu1 %v480_v39  ;;  %v2140_v17 = vld [vmem:[%s3913_s1 + $0x58] sm:$0xf] }
 0x130   : > { %1478 = vmatpush.bf16.msra.mxu2 %v2730_v58  ;;  %1545 = vmatpush.bf16.msra.mxu3 %v2945_v32  ;;  %3969 = vst [vmem:[#allocation11_spill] sm:$0xff] %v3165_v30  ;;  %v3170_v58 = vor.u32 %v2415_v44, %v2234_v53  ;;  %v3193_v1 = vor.u32 %v2393_v59, %v2140_v17  ;;  %v2162_v17 = vld [vmem:[%s3913_s1 + $0x94] sm:$0xf0] }
 0x131   : > { %1342 = vmatpush.bf16.msrb.mxu0 %v494_v2 }
 0x132   : > { %3970 = vst [vmem:[#allocation12_spill] sm:$0xff] %v3170_v58  ;;  %v3172_v32 = vpop.permute.xlu2 %639 }
 0x133   : > { %3971 = vst [vmem:[#allocation13_spill] sm:$0xff] %v3172_v32  ;;  %1279 = vmatmul.bf16.gmra.mxu3 %v3157_v8 }
 0x134   : > { %1479 = vmatpush.bf16.msra.mxu2 %v2754_v0  ;;  %1546 = vmatpush.bf16.msra.mxu3 %v2882_v62  ;;  %v2108_v0 = vld [vmem:[%s3913_s1 + $0x10] sm:$0xf] }
 0x135   : > { %1611 = vmatpush.bf16.msra.mxu0 %v2822_v33  ;;  %v2384_v33 = vld [vmem:[%s3913_s1 + $0x20] sm:$0xf0] }
 0x136   : > { %1171 = vmatmul.bf16.gmra.mxu1 %v3170_v58  ;;  %v3191_v62 = vpop.permute.xlu0 %664  ;;  %v3195_v4 = vor.u32 %v2384_v33, %v2108_v0 }
 0x137   : > { %3972 = vst [vmem:[#allocation14_spill] sm:$0xff] %v3191_v62  ;;  %v3197_v6 = vpop.permute.xlu1 %669 }
 0x138   : > { %1480 = vmatpush.bf16.msra.mxu2 %v2701_v49  ;;  %1547 = vmatpush.bf16.msra.mxu3 %v3027_v26  ;;  %3973 = vst [vmem:[#allocation15_spill] sm:$0xff] %v3197_v6  ;;  %v3199_v55 = vpop.f32.mrf.mxu0  ;;  %v2142_v26 = vld [vmem:[%s3913_s1 + $0x6c] sm:$0xf0] }
 0x139   : > { %1612 = vmatpush.bf16.msra.mxu0 %v2873_v56  ;;  %v2391_v56 = vld [vmem:[%s3913_s1 + $0x5c] sm:$0xf] }
 0x13a   : > { %v3203_v49 = vpop.permute.xlu2 %624 }
 0x13b   : > { %3974 = vst [vmem:[#allocation16_spill] sm:$0xff] %v3203_v49  ;;  %1215 = vmatmul.bf16.gmra.mxu2 %v3193_v1  ;;  %2330 = vmatmul.msk.bf16.vlgmr.msrb.gmra.mxu0 %vm1022_vm8, %v3195_v4 }
 0x13c   : > { %1548 = vmatpush.bf16.msra.mxu3 %v3048_v48  ;;  %v3218_v48 = vor.u32 %v2391_v56, %v2142_v26 }
 0x13d   : > { %1613 = vmatpush.bf16.msra.mxu0 %v2809_v27 }
 0x13e   : > { %v3216_v27 = vpop.permute.xlu0 %649 }
 0x13f   : > { %3975 = vst [vmem:[#allocation17_spill] sm:$0xff] %v3216_v27  ;;  %v3220_v29 = vpop.permute.xlu1 %659  ;;  %v1108_v26 = vpop.f32.mrf.mxu3 }
 0x140   : > { %1549 = vmatpush.bf16.msra.mxu3 %v3081_v23  ;;  %3976 = vst [vmem:[#allocation18_spill] sm:$0xff] %v3220_v29  ;;  %v1070_v24 = vpop.f32.mrf.mxu0  ;;  %v2160_v23 = vld [vmem:[%s3913_s1 + $0x80] sm:$0xf] }
 0x141   : > { %1614 = vmatpush.bf16.msra.mxu0 %v2965_v42  ;;  %v2398_v42 = vld [vmem:[%s3913_s1 + $0x90] sm:$0xf0] }
 0x142   : > { %v3223_v5 = vpop.permute.xlu2 %709  ;;  %v3244_v60 = vor.u32 %v2398_v42, %v2160_v23 }
 0x143   : > { %3977 = vst [vmem:[#allocation19_spill] sm:$0xff] %v3223_v5  ;;  %1284 = vmatmul.bf16.gmra.mxu3 %v3218_v48  ;;  %v3226_v54 = vpop.f32.mrf.mxu1 }
 0x145   : > { %1615 = vmatpush.bf16.msra.mxu0 %v3012_v9  ;;  %v2389_v9 = vld [vmem:[%s3913_s1 + $0x48] sm:$0xf0] }
 0x146   : > { %1412 = vmatmul.bf16.vlgmr.msrb.gmra.mxu1 %v2741_v61  ;;  %v3242_v50 = vpop.permute.xlu0 %714  ;;  %v3246_v39 = vor.u32 %v2389_v9, %v2128_v22  ;;  %v2396_v61 = vld [vmem:[%s3913_s1 + $0x84] sm:$0xf]  ;;  %v2180_v22 = vld [vmem:[%s3913_s1 + $0xa8] sm:$0xf]  ;;  %v2403_v9 = vld [vmem:[%s3913_s1 + $0xb8] sm:$0xf0] }
 0x147   : > { %3978 = vst [vmem:[#allocation20_spill] sm:$0xff] %v3242_v50  ;;  %v3248_v2 = vpop.permute.xlu1 %634  ;;  %v3265_v0 = vor.u32 %v2396_v61, %v2162_v17  ;;  %v2148_v61 = vld [vmem:[%s3913_s1 + $0x60] sm:$0xf]  ;;  %v2394_v17 = vld [vmem:[%s3913_s1 + $0x70] sm:$0xf0]  ;;  %v3290_v52 = vor.u32 %v2403_v9, %v2180_v22 }
 0x148   : > { %3979 = vst [vmem:[#allocation21_spill] sm:$0xff] %v3248_v2  ;;  %v1073_v44 = vpop.f32.mrf.mxu0  ;;  %v2182_v22 = vld [vmem:[%s3913_s1 + $0xbc] sm:$0xf0] }
 0x149   : > { %1616 = vmatpush.bf16.msra.mxu0 %v2954_v35  ;;  %v1177_v59 = vpop.f32.mrf.mxu2  ;;  %3982 = vst [vmem:[#allocation24_spill] sm:$0xff] %v3265_v0 }
 0x14a   : > { %v3251_v53 = vpop.permute.xlu2 %694 }
 0x14b   : > { %3980 = vst [vmem:[#allocation22_spill] sm:$0xff] %v3251_v53  ;;  %1220 = vmatmul.bf16.gmra.mxu2 %v3244_v60  ;;  %2331 = vmatmul.msk.bf16.gmra.mxu0 %vm1022_vm8, %v3246_v39  ;;  %v1139_v35 = vpop.f32.mrf.mxu1 }
 0x14d   : > { %1617 = vmatpush.bf16.msra.mxu0 %v3056_v57 }
 0x14e   : > { %v3263_v57 = vpop.permute.xlu0 %629 }
 0x14f   : > { %3981 = vst [vmem:[#allocation23_spill] sm:$0xff] %v3263_v57  ;;  %v3267_v33 = vpop.permute.xlu1 %719 }
 0x150   : > { %3983 = vst [vmem:[#allocation25_spill] sm:$0xff] %v3267_v33  ;;  %v1075_v56 = vpop.f32.mrf.mxu0 }
 0x151   : > { %1618 = vmatpush.bf16.msra.mxu0 %v3102_v45  ;;  %v3297_v16 = vpop.f32.mrf.mxu2 }
 0x152   : > { %v3269_v23 = vpop.permute.xlu2 %609  ;;  %3988 = vst [vmem:[#allocation30_spill] sm:$0xff] %v3297_v16 }
 0x153   : > { %3984 = vst [vmem:[#allocation26_spill] sm:$0xff] %v3269_v23  ;;  %1289 = vmatmul.bf16.gmra.mxu3 %v3265_v0  ;;  %v1142_v42 = vpop.f32.mrf.mxu1  ;;  %v1071_v45 = vadd.f32 %v1070_v24, %v3269_v23  ;;  %v3292_v24 = vor.u32 %v2394_v17, %v2148_v61 }
 0x155   : > { %v3285_v11 = vadd.f32 %v1139_v35, %v1071_v45  ;;  %3986 = vst [vmem:[#allocation28_spill] sm:$0xff] %v3292_v24  ;;  %v2401_v35 = vld [vmem:[%s3913_s1 + $0xac] sm:$0xf] }
 0x156   : > { %1417 = vmatmul.bf16.gmra.mxu1 %v2811_v28  ;;  %v3288_v21 = vpop.permute.xlu0 %614 }
 0x157   : > { %3985 = vst [vmem:[#allocation27_spill] sm:$0xff] %v3288_v21  ;;  %v3294_v5 = vpop.permute.xlu1 %704  ;;  %v1074_v33 = vadd.f32 %v1073_v44, %v3288_v21  ;;  %v3310_v44 = vpop.f32.mrf.mxu3 }
 0x158   : > { %3987 = vst [vmem:[#allocation29_spill] sm:$0xff] %v3294_v5  ;;  %v1078_v23 = vpop.f32.mrf.mxu0 }
 0x159   : > { %v3299_v58 = vadd.f32 %v1142_v42, %v1074_v33  ;;  %3989 = vst [vmem:[#allocation31_spill] sm:$0xff] %v3310_v44  ;;  %v3314_v33 = vor.u32 %v2401_v35, %v2182_v22  ;;  %v1079_v61 = vadd.f32 %v1078_v23, %v3203_v49  ;;  %v1182_v21 = vpop.f32.mrf.mxu2  ;;  %v2408_v35 = vld [vmem:[%s3913_s1 + $0xe0] sm:$0xf0]  ;;  %v2168_v23 = vld [vmem:[%s3913_s1 + $0x88] sm:$0xf] }
 0x15b   : > { %1225 = vmatmul.bf16.gmra.mxu2 %v3290_v52  ;;  %2332 = vmatmul.msk.bf16.gmra.mxu0 %vm1022_vm8, %v3292_v24  ;;  %v1144_v28 = vpop.f32.mrf.mxu1  ;;  %3991 = vst [vmem:[#allocation33_spill] sm:$0xff] %v3314_v33 }
 0x15e   : > { %v3312_v45 = vpop.permute.xlu0 %699 }
 0x15f   : > { %3990 = vst [vmem:[#allocation32_spill] sm:$0xff] %v3312_v45  ;;  %v3316_v42 = vpop.permute.xlu1 %619  ;;  %v1113_v22 = vpop.f32.mrf.mxu3 }
 0x160   : > { %3992 = vst [vmem:[#allocation34_spill] sm:$0xff] %v3316_v42  ;;  %v1080_v9 = vpop.f32.mrf.mxu0  ;;  %v1076_v17 = vadd.f32 %v1075_v56, %v3316_v42  ;;  %v2399_v56 = vld [vmem:[%s3913_s1 + $0x98] sm:$0xf0]  ;;  %v3340_v42 = vor.u32 %v2408_v35, %v2200_v7 }
 0x161   : > { %v3342_v49 = vor.u32 %v2399_v56, %v2168_v23  ;;  %v2220_v56 = vld [vmem:[%s3913_s1 + $0xf8] sm:$0xf] }
 0x162   : > { %v3320_v40 = vadd.f32 %v1144_v28, %v1076_v17 }
 0x163   : > { %1294 = vmatmul.bf16.gmra.mxu3 %v3314_v33  ;;  %v1147_v0 = vpop.f32.mrf.mxu1 }
 0x164   : > { %v3335_v28 = vadd.f32 %v1147_v0, %v1079_v61  ;;  %v1081_v0 = vadd.f32 %v1080_v9, %v3263_v57 }
 0x166   : > { %1422 = vmatmul.bf16.gmra.mxu1 %v2884_v10  ;;  %v3338_v17 = vpop.permute.xlu0 %684 }
 0x167   : > { %3993 = vst [vmem:[#allocation35_spill] sm:$0xff] %v3338_v17  ;;  %v3344_v45 = vpop.permute.xlu1 %604  ;;  %v1109_v33 = vadd.f32 %v1108_v26, %v3338_v17  ;;  %v2406_v26 = vld [vmem:[%s3913_s1 + $0xd4] sm:$0xf]  ;;  %v3372_v35 = vpop.f32.mrf.mxu3 }
 0x168   : > { %v1083_v16 = vpop.f32.mrf.mxu0  ;;  %v1069_v44 = vadd.f32 %v3199_v55, %v3344_v45  ;;  %v2202_v55 = vld [vmem:[%s3913_s1 + $0xe4] sm:$0xf0]  ;;  %3995 = vst [vmem:[#allocation37_spill] sm:$0xff] %v3372_v35 }
 0x169   : > { %v3349_v24 = vadd.f32 %v1177_v59, %v1109_v33  ;;  %v3364_v59 = vpop.f32.mrf.mxu2  ;;  %v1084_v9 = vadd.f32 %v1083_v16, %v3248_v2  ;;  %v2188_v16 = vld [vmem:[%s3913_s1 + $0xb0] sm:$0xf] }
 0x16a   : > { %v3353_v10 = vadd.f32 %v3226_v54, %v1069_v44  ;;  %3994 = vst [vmem:[#allocation36_spill] sm:$0xff] %v3364_v59  ;;  %v3368_v54 = vor.u32 %v2406_v26, %v2202_v55  ;;  %v1114_v44 = vadd.f32 %v1113_v22, %v3251_v53  ;;  %v2413_v22 = vld [vmem:[%s3913_s1 + $0x108] sm:$0xf0] }
 0x16b   : > { %1230 = vmatmul.bf16.gmra.mxu2 %v3340_v42  ;;  %2333 = vmatmul.msk.bf16.gmra.mxu0 %vm1022_vm8, %v3342_v49  ;;  %v1149_v7 = vpop.f32.mrf.mxu1  ;;  %v3392_v55 = vor.u32 %v2413_v22, %v2220_v56  ;;  %v2222_v56 = vld [vmem:[%s3913_s1 + $0x10c] sm:$0xf0] }
 0x16c   : > { %v3366_v33 = vadd.f32 %v1149_v7, %v1081_v0  ;;  %v3378_v17 = vadd.f32 %v1182_v21, %v1114_v44  ;;  %v2404_v7 = vld [vmem:[%s3913_s1 + $0xc0] sm:$0xf0] }
 0x16d   : > { %v3394_v21 = vor.u32 %v2404_v7, %v2188_v16 }
 0x170   : > { %v1085_v61 = vpop.f32.mrf.mxu0 }
 0x171   : > { %v1187_v26 = vpop.f32.mrf.mxu2 }
 0x173   : > { %1299 = vmatmul.bf16.gmra.mxu3 %v3368_v54  ;;  %v1152_v23 = vpop.f32.mrf.mxu1 }
 0x174   : > { %v3380_v0 = vadd.f32 %v1152_v23, %v1084_v9  ;;  %v1086_v9 = vadd.f32 %v1085_v61, %v3172_v32  ;;  %v1118_v23 = vpop.f32.mrf.mxu3 }
 0x175   : > { %v1119_v61 = vadd.f32 %v1118_v23, %v3294_v5  ;;  %v2418_v23 = vld [vmem:[%s3913_s1 + $0x130] sm:$0xf0] }
 0x176   : > { %1427 = vmatmul.bf16.gmra.mxu1 %v2956_v36  ;;  %v2411_v36 = vld [vmem:[%s3913_s1 + $0xfc] sm:$0xf] }
 0x177   : > { %v3408_v22 = vor.u32 %v2411_v36, %v2222_v56  ;;  %v3418_v57 = vadd.f32 %v1187_v26, %v1119_v61  ;;  %v2409_v36 = vld [vmem:[%s3913_s1 + $0xe8] sm:$0xf0] }
 0x178   : > { %v1088_v44 = vpop.f32.mrf.mxu0 }
 0x179   : > { %v1089_v16 = vadd.f32 %v1088_v44, %v3144_v31  ;;  %v3412_v32 = vpop.f32.mrf.mxu2  ;;  %3997 = vst [vmem:[#allocation39_spill] sm:$0xff] %v3418_v57  ;;  %v2208_v44 = vld [vmem:[%s3913_s1 + $0xd8] sm:$0xf] }
 0x17a   : > { %3996 = vst [vmem:[#allocation38_spill] sm:$0xff] %v3412_v32  ;;  %v3436_v61 = vor.u32 %v2409_v36, %v2208_v44 }
 0x17b   : > { %1235 = vmatmul.bf16.gmra.mxu2 %v3392_v55  ;;  %2334 = vmatmul.msk.bf16.gmra.mxu0 %vm1022_vm8, %v3394_v21  ;;  %v1154_v53 = vpop.f32.mrf.mxu1 }
 0x17c   : > { %v3400_v2 = vadd.f32 %v1154_v53, %v1086_v9  ;;  %v2240_v9 = vld [vmem:[%s3913_s1 + $0x120] sm:$0xf]  ;;  %v3431_v56 = vpop.f32.mrf.mxu3 }
 0x17d   : > { %3998 = vst [vmem:[#allocation40_spill] sm:$0xff] %v3431_v56  ;;  %v3434_v26 = vor.u32 %v2418_v23, %v2240_v9  ;;  %v2242_v9 = vld [vmem:[%s3913_s1 + $0x134] sm:$0xf0] }
 0x180   : > { %v1090_v7 = vpop.f32.mrf.mxu0 }
 0x181   : > { %v1192_v5 = vpop.f32.mrf.mxu2 }
 0x183   : > { %1304 = vmatmul.bf16.gmra.mxu3 %v3408_v22  ;;  %v1157_v53 = vpop.f32.mrf.mxu1 }
 0x184   : > { %v3420_v59 = vadd.f32 %v1157_v53, %v1089_v16  ;;  %v1091_v53 = vadd.f32 %v1090_v7, %v3216_v27  ;;  %v1123_v23 = vpop.f32.mrf.mxu3 }
 0x185   : > { %v1124_v7 = vadd.f32 %v1123_v23, %v3242_v50 }
 0x186   : > { %1432 = vmatmul.bf16.gmra.mxu1 %v3021_v14  ;;  %v2416_v14 = vld [vmem:[%s3913_s1 + $0x124] sm:$0xf] }
 0x187   : > { %v3450_v44 = vor.u32 %v2416_v14, %v2242_v9  ;;  %v3458_v32 = vadd.f32 %v1192_v5, %v1124_v7  ;;  %v2423_v14 = vld [vmem:[%s3913_s1 + $0x158] sm:$0xf0]  ;;  %v2414_v9 = vld [vmem:[%s3913_s1 + $0x110] sm:$0xf0] }
 0x188   : > { %v1093_v16 = vpop.f32.mrf.mxu0 }
 0x189   : > { %3999 = vst [vmem:[#allocation41_spill] sm:$0xff] %v3450_v44  ;;  %v1094_v36 = vadd.f32 %v1093_v16, %v3117_v37  ;;  %v3462_v56 = vpop.f32.mrf.mxu2  ;;  %v2228_v16 = vld [vmem:[%s3913_s1 + $0x100] sm:$0xf] }
 0x18a   : > { %4000 = vst [vmem:[#allocation42_spill] sm:$0xff] %v3458_v32  ;;  %v3476_v23 = vor.u32 %v2414_v9, %v2228_v16 }
 0x18b   : > { %1240 = vmatmul.bf16.gmra.mxu2 %v3434_v26  ;;  %2335 = vmatmul.msk.bf16.gmra.mxu0 %vm1022_vm8, %v3436_v61  ;;  %v1159_v31 = vpop.f32.mrf.mxu1  ;;  %4001 = vst [vmem:[#allocation43_spill] sm:$0xff] %v3462_v56  ;;  %v2428_v56 = vld [vmem:[%s3913_s1 + $0x180] sm:$0xf0] }
 0x18c   : > { %v3442_v57 = vadd.f32 %v1159_v31, %v1091_v53  ;;  %v2260_v53 = vld [vmem:[%s3913_s1 + $0x148] sm:$0xf]  ;;  %4002 = vst [vmem:[#allocation44_spill] sm:$0xff] %v3476_v23  ;;  %v3484_v37 = vpop.f32.mrf.mxu3 }
 0x18d   : > { %v3474_v5 = vor.u32 %v2423_v14, %v2260_v53  ;;  %4003 = vst [vmem:[#allocation45_spill] sm:$0xff] %v3484_v37  ;;  %v2262_v53 = vld [vmem:[%s3913_s1 + $0x15c] sm:$0xf0] }
 0x190   : > { %v1095_v27 = vpop.f32.mrf.mxu0 }
 0x193   : > { %1309 = vmatmul.bf16.gmra.mxu3 %v3450_v44  ;;  %v1162_v31 = vpop.f32.mrf.mxu1 }
 0x194   : > { %v3460_v35 = vadd.f32 %v1162_v31, %v1094_v36  ;;  %v1096_v36 = vadd.f32 %v1095_v27, %v3220_v29 }
 0x196   : > { %1437 = vmatmul.bf16.gmra.mxu1 %v3053_v47  ;;  %v2421_v47 = vld [vmem:[%s3913_s1 + $0x14c] sm:$0xf] }
 0x197   : > { %v3493_v16 = vor.u32 %v2421_v47, %v2262_v53 }
 0x198   : > { %v1098_v7 = vpop.f32.mrf.mxu0 }
 0x199   : > { %4004 = vst [vmem:[#allocation46_spill] sm:$0xff] %v3493_v16  ;;  %v1099_v9 = vadd.f32 %v1098_v7, %v3191_v62  ;;  %v2419_v7 = vld [vmem:[%s3913_s1 + $0x138] sm:$0xf0] }
 0x19b   : > { %1245 = vmatmul.bf16.gmra.mxu2 %v3474_v5  ;;  %2336 = vmatmul.msk.bf16.gmra.mxu0 %vm1022_vm8, %v3476_v23  ;;  %v1164_v31 = vpop.f32.mrf.mxu1 }
 0x19c   : > { %v3482_v50 = vadd.f32 %v1164_v31, %v1096_v36  ;;  %v2280_v31 = vld [vmem:[%s3913_s1 + $0x170] sm:$0xf] }
 0x19e   : > { %v1206_v14 = vpop.f32.mrf.mxu2 }
 0x19f   : > { %v1207_v27 = vadd.f32 %v1206_v14, %v3353_v10  ;;  %v2248_v10 = vld [vmem:[%s3913_s1 + $0x128] sm:$0xf] }
 0x1a0   : > { %v1100_v29 = vpop.f32.mrf.mxu0  ;;  %v3515_v62 = vor.u32 %v2419_v7, %v2248_v10 }
 0x1a1   : > { %v1101_v32 = vadd.f32 %v1100_v29, %v3197_v6  ;;  %v2433_v6 = vld [vmem:[%s3913_s1 + $0x1a8] sm:$0xf0] }
 0x1a2   : > { %4006 = vst [vmem:[#allocation48_spill] sm:$0xff] %v3515_v62 }
 0x1a3   : > { %1314 = vmatmul.bf16.gmra.mxu3 %v3493_v16  ;;  %v1167_v36 = vpop.f32.mrf.mxu1 }
 0x1a4   : > { %v3500_v44 = vadd.f32 %v1167_v36, %v1099_v9  ;;  %v3513_v36 = vor.u32 %v2428_v56, %v2280_v31 }
 0x1a6   : > { %v1208_v47 = vpop.f32.mrf.mxu2  ;;  %v1275_v53 = vpop.f32.mrf.mxu3  ;;  %1442 = vmatmul.bf16.gmra.mxu1 %v3086_v34  ;;  %4005 = vst [vmem:[#allocation47_spill] sm:$0xff] %v3513_v36  ;;  %v2282_v34 = vld [vmem:[%s3913_s1 + $0x184] sm:$0xf0] }
 0x1a7   : > { %v1209_v14 = vadd.f32 %v1208_v47, %v3285_v11  ;;  %v1276_v9 = vadd.f32 %v1275_v53, %v1207_v27  ;;  %v2426_v11 = vld [vmem:[%s3913_s1 + $0x174] sm:$0xf] }
 0x1a8   : > { %v1103_v16 = vpop.f32.mrf.mxu0  ;;  %v3530_v10 = vor.u32 %v2426_v11, %v2282_v34 }
 0x1a9   : > { %v1104_v7 = vadd.f32 %v1103_v16, %v3165_v30  ;;  %v2424_v16 = vld [vmem:[%s3913_s1 + $0x160] sm:$0xf0] }
 0x1aa   : > { %4007 = vst [vmem:[#allocation49_spill] sm:$0xff] %v3530_v10 }
 0x1ab   : > { %1250 = vmatmul.bf16.gmra.mxu2 %v3513_v36  ;;  %2337 = vmatmul.msk.bf16.gmra.mxu0 %vm1022_vm8, %v3515_v62  ;;  %v1169_v37 = vpop.f32.mrf.mxu1 }
 0x1ac   : > { %v3521_v23 = vadd.f32 %v1169_v37, %v1101_v32  ;;  %v2300_v32 = vld [vmem:[%s3913_s1 + $0x198] sm:$0xf] }
 0x1ae   : > { %v1211_v56 = vpop.f32.mrf.mxu2  ;;  %v1277_v27 = vpop.f32.mrf.mxu3 }
 0x1af   : > { %v1212_v29 = vadd.f32 %v1211_v56, %v3299_v58  ;;  %v1278_v31 = vadd.f32 %v1277_v27, %v1209_v14  ;;  %v2268_v58 = vld [vmem:[%s3913_s1 + $0x150] sm:$0xf]  ;;  %v3550_v27 = vor.u32 %v2433_v6, %v2300_v32 }
 0x1b0   : > { %v1105_v47 = vpop.f32.mrf.mxu0 }
 0x1b3   : > { %1319 = vmatmul.bf16.gmra.mxu3 %v3530_v10  ;;  %v1172_v37 = vpop.f32.mrf.mxu1  ;;  %v1106_v10 = vadd.f32 %v1105_v47, %v3090_v38 }
 0x1b4   : > { %v3537_v53 = vadd.f32 %v1172_v37, %v1104_v7  ;;  %v3552_v7 = vor.u32 %v2424_v16, %v2268_v58 }
 0x1b6   : > { %v1213_v14 = vpop.f32.mrf.mxu2  ;;  %v1280_v11 = vpop.f32.mrf.mxu3  ;;  %1447 = vmatmul.bf16.gmra.mxu1 %v3137_v12  ;;  %v2302_v12 = vld [vmem:[%s3913_s1 + $0x1ac] sm:$0xf0] }
 0x1b7   : > { %v1214_v34 = vadd.f32 %v1213_v14, %v3320_v40  ;;  %v1281_v56 = vadd.f32 %v1280_v11, %v1212_v29  ;;  %v2431_v40 = vld [vmem:[%s3913_s1 + $0x19c] sm:$0xf]  ;;  %v2320_v11 = vld [vmem:[%s3913_s1 + $0x1c0] sm:$0xf] }
 0x1b8   : > { %v1344_v37 = vpop.f32.mrf.mxu0  ;;  %v3567_v32 = vor.u32 %v2431_v40, %v2302_v12 }
 0x1b9   : > { %v1345_v30 = vadd.f32 %v1344_v37, %v1276_v9  ;;  %v2438_v37 = vld [vmem:[%s3913_s1 + $0x1d0] sm:$0xf0] }
 0x1ba   : > { %4008 = vst [vmem:[#allocation50_spill] sm:$0xff] %v3567_v32 }
 0x1bb   : > { %1255 = vmatmul.bf16.gmra.mxu2 %v3550_v27  ;;  %2338 = vmatmul.msk.bf16.gmra.mxu0 %vm1022_vm8, %v3552_v7  ;;  %v1174_v62 = vpop.f32.mrf.mxu1  ;;  %v1749_v14 = vmax.f32 %v1345_v30, 0.0  ;;  %v2429_v30 = vld [vmem:[%s3913_s1 + $0x188] sm:$0xf0] }
 0x1bc   : > { %v3558_v36 = vadd.f32 %v1174_v62, %v1106_v10 }
 0x1be   : > { %v1216_v6 = vpop.f32.mrf.mxu2  ;;  %v1282_v9 = vpop.f32.mrf.mxu3 }
 0x1bf   : > { %v1217_v29 = vadd.f32 %v1216_v6, %v3335_v28  ;;  %v1283_v47 = vadd.f32 %v1282_v9, %v1214_v34  ;;  %v2288_v28 = vld [vmem:[%s3913_s1 + $0x178] sm:$0xf]  ;;  %v3588_v9 = vor.u32 %v2438_v37, %v2320_v11 }
 0x1c0   : > { %v1346_v58 = vpop.f32.mrf.mxu0 }
 0x1c1   : > { %v1347_v16 = vadd.f32 %v1346_v58, %v1278_v31  ;;  %4009 = vst [vmem:[#allocation51_spill] sm:$0xff] %v3588_v9  ;;  %v3590_v58 = vor.u32 %v2429_v30, %v2288_v28 }
 0x1c3   : > { %v1751_v62 = vmax.f32 %v1347_v16, 0.0  ;;  %1324 = vmatmul.bf16.gmra.mxu3 %v3567_v32  ;;  %v3570_v10 = vpop.f32.mrf.mxu1  ;;  %4010 = vst [vmem:[#allocation52_spill] sm:$0xff] %v3590_v58  ;;  %v2308_v32 = vld [vmem:[%s3913_s1 + $0x1a0] sm:$0xf] }
 0x1c5   : > { %v3584_v31 = vpack.c.bf16 %v1751_v62, %v1749_v14 }
 0x1c6   : > { %v1218_v34 = vpop.f32.mrf.mxu2  ;;  %v1285_v40 = vpop.f32.mrf.mxu3  ;;  %1452 = vmatmul.bf16.gmra.mxu1 %v2780_v13  ;;  %v2436_v13 = vld [vmem:[%s3913_s1 + $0x1c4] sm:$0xf] }
 0x1c7   : > { %v1219_v12 = vadd.f32 %v1218_v34, %v3366_v33  ;;  %v1286_v6 = vadd.f32 %v1285_v40, %v1217_v29  ;;  %v2322_v33 = vld [vmem:[%s3913_s1 + $0x1d4] sm:$0xf0] }
 0x1c8   : > { %v1349_v16 = vpop.f32.mrf.mxu0  ;;  %v3604_v37 = vor.u32 %v2436_v13, %v2322_v33 }
 0x1c9   : > { %v1350_v38 = vadd.f32 %v1349_v16, %v1281_v56 }
 0x1ca   : > { %4011 = vst [vmem:[#allocation53_spill] sm:$0xff] %v3604_v37 }
 0x1cb   : > { %1260 = vmatmul.bf16.gmra.mxu2 %v3588_v9  ;;  %2339 = vmatmul.msk.bf16.gmra.mxu0 %vm1022_vm8, %v3590_v58  ;;  %v3595_v14 = vpop.f32.mrf.mxu1  ;;  %v1753_v34 = vmax.f32 %v1350_v38, 0.0  ;;  %v2434_v58 = vld [vmem:[%s3913_s1 + $0x1b0] sm:$0xf0] }
 0x1cc   : > { %v3619_v33 = vor.u32 %v2434_v58, %v2308_v32 }
 0x1ce   : > { %v1221_v29 = vpop.f32.mrf.mxu2  ;;  %v1287_v62 = vpop.f32.mrf.mxu3 }
 0x1cf   : > { %v1222_v11 = vadd.f32 %v1221_v29, %v3380_v0  ;;  %v1288_v56 = vadd.f32 %v1287_v62, %v1219_v12 }
 0x1d0   : > { %v1351_v28 = vpop.f32.mrf.mxu0 }
 0x1d1   : > { %v1352_v30 = vadd.f32 %v1351_v28, %v1283_v47 }
 0x1d3   : > { %v1755_v40 = vmax.f32 %v1352_v30, 0.0  ;;  %1329 = vmatmul.bf16.gmra.mxu3 %v3604_v37  ;;  %v3607_v16 = vpop.f32.mrf.mxu1 }
 0x1d5   : > { %v3615_v0 = vpack.c.bf16 %v1755_v40, %v1753_v34 }
 0x1d6   : > { %v1223_v12 = vpop.f32.mrf.mxu2  ;;  %v1290_v13 = vpop.f32.mrf.mxu3  ;;  %1457 = vmatmul.bf16.gmra.mxu1 %v2853_v46 }
 0x1d7   : > { %v1224_v38 = vadd.f32 %v1223_v12, %v3400_v2  ;;  %v1291_v47 = vadd.f32 %v1290_v13, %v1222_v11 }
 0x1d8   : > { %v1354_v29 = vpop.f32.mrf.mxu0 }
 0x1d9   : > { %v1355_v62 = vadd.f32 %v1354_v29, %v1286_v6  ;;  %v2328_v6 = vld [vmem:[%s3913_s1 + $0x1c8] sm:$0xf] }
 0x1db   : > { %2340 = vmatmul.msk.bf16.gmra.mxu0 %vm1022_vm8, %v3619_v33  ;;  %1481 = vmatmul.bf16.vlgmr.msra.gmra.mxu2 %v2785_v15  ;;  %v3624_v28 = vpop.f32.mrf.mxu1  ;;  %v1757_v2 = vmax.f32 %v1355_v62, 0.0  ;;  %v2439_v15 = vld [vmem:[%s3913_s1 + $0x1d8] sm:$0xf0] }
 0x1de   : > { %v1226_v30 = vpop.f32.mrf.mxu2  ;;  %v1292_v34 = vpop.f32.mrf.mxu3 }
 0x1df   : > { %v1227_v40 = vadd.f32 %v1226_v30, %v3420_v59  ;;  %v1293_v37 = vadd.f32 %v1292_v34, %v1224_v38 }
 0x1e0   : > { %v1356_v46 = vpop.f32.mrf.mxu0 }
 0x1e1   : > { %v1357_v9 = vadd.f32 %v1356_v46, %v1288_v56 }
 0x1e3   : > { %v1759_v11 = vmax.f32 %v1357_v9, 0.0  ;;  %1550 = vmatmul.bf16.vlgmr.msra.gmra.mxu3 %v3088_v25  ;;  %v3628_v32 = vpop.f32.mrf.mxu1  ;;  %v3640_v25 = vor.u32 %v2439_v15, %v2328_v6 }
 0x1e5   : > { %v3636_v58 = vpack.c.bf16 %v1759_v11, %v1757_v2 }
 0x1e6   : > { %v1228_v59 = vpop.f32.mrf.mxu2  ;;  %v1295_v12 = vpop.f32.mrf.mxu3  ;;  %1462 = vmatmul.bf16.gmra.mxu1 %v2925_v18 }
 0x1e7   : > { %v1229_v9 = vadd.f32 %v1228_v59, %v3442_v57  ;;  %v1296_v56 = vadd.f32 %v1295_v12, %v1227_v40 }
 0x1e8   : > { %v1359_v13 = vpop.f32.mrf.mxu0 }
 0x1e9   : > { %v1360_v38 = vadd.f32 %v1359_v13, %v1291_v47 }
 0x1eb   : > { %2341 = vmatmul.msk.bf16.gmra.mxu0 %vm1022_vm8, %v3640_v25  ;;  %1486 = vmatmul.bf16.gmra.mxu2 %v2858_v51  ;;  %v3645_v29 = vpop.f32.mrf.mxu1  ;;  %v1761_v57 = vmax.f32 %v1360_v38, 0.0 }
 0x1ee   : > { %v1231_v62 = vpop.f32.mrf.mxu2  ;;  %v1297_v30 = vpop.f32.mrf.mxu3 }
 0x1ef   : > { %v1232_v34 = vadd.f32 %v1231_v62, %v3460_v35  ;;  %v1298_v46 = vadd.f32 %v1297_v30, %v1229_v9 }
 0x1f0   : > { %v1361_v18 = vpop.f32.mrf.mxu0 }
 0x1f1   : > { %v1362_v2 = vadd.f32 %v1361_v18, %v1293_v37 }
 0x1f3   : > { %v1763_v40 = vmax.f32 %v1362_v2, 0.0  ;;  %1555 = vmatmul.bf16.gmra.mxu3 %v3139_v19  ;;  %v3649_v11 = vpop.f32.mrf.mxu1 }
 0x1f5   : > { %v3651_v47 = vpack.c.bf16 %v1763_v40, %v1761_v57 }
 0x1f6   : > { %v1233_v6 = vpop.f32.mrf.mxu2  ;;  %v1300_v15 = vpop.f32.mrf.mxu3  ;;  %1467 = vmatmul.bf16.gmra.mxu1 %v2993_v63 }
 0x1f7   : > { %v1301_v51 = vadd.f32 %v1300_v15, %v1232_v34 }
 0x1f8   : > { %v1364_v59 = vpop.f32.mrf.mxu0 }
 0x1f9   : > { %v1365_v12 = vadd.f32 %v1364_v59, %v1296_v56 }
 0x1fb   : > { %1491 = vmatmul.bf16.gmra.mxu2 %v2931_v20  ;;  %1619 = vmatmul.bf16.vlgmr.msra.gmra.mxu0 %v3106_v41  ;;  %v3656_v35 = vpop.f32.mrf.mxu1  ;;  %v1765_v38 = vmax.f32 %v1365_v12, 0.0 }
 0x1fe   : > { %v1236_v37 = vpop.f32.mrf.mxu2  ;;  %v1302_v9 = vpop.f32.mrf.mxu3 }
 0x200   : > { %v1366_v19 = vpop.f32.mrf.mxu0 }
 0x201   : > { %v1367_v13 = vadd.f32 %v1366_v19, %v1298_v46  ;;  %v1234_v46 = vadd.f32 %v1233_v6, %v3482_v50  ;;  %v1237_v6 = vadd.f32 %v1236_v37, %v3500_v44 }
 0x203   : > { %v1767_v62 = vmax.f32 %v1367_v13, 0.0  ;;  %1560 = vmatmul.bf16.gmra.mxu3 %v3193_v1  ;;  %v3659_v30 = vpop.f32.mrf.mxu1  ;;  %v1303_v2 = vadd.f32 %v1302_v9, %v1234_v46 }
 0x205   : > { %v3661_v63 = vpack.c.bf16 %v1767_v62, %v1765_v38 }
 0x206   : > { %v1238_v34 = vpop.f32.mrf.mxu2  ;;  %v1305_v56 = vpop.f32.mrf.mxu3  ;;  %2342 = vmatmul.msk.bf16.vlgmr.msra.gmra.mxu1 %vm1022_vm8, %v3195_v4 }
 0x207   : > { %v1239_v9 = vadd.f32 %v1238_v34, %v3521_v23  ;;  %v1306_v13 = vadd.f32 %v1305_v56, %v1237_v6  ;;  %v4012_v56 = vld [vmem:[#allocation28_spill] sm:$0xff] }
 0x208   : > { %v1369_v20 = vpop.f32.mrf.mxu0 }
 0x209   : > { %v1370_v57 = vadd.f32 %v1369_v20, %v1301_v51 }
 0x20b   : > { %1496 = vmatmul.bf16.gmra.mxu2 %v2998_v3  ;;  %1624 = vmatmul.bf16.gmra.mxu0 %v3157_v8  ;;  %v3667_v41 = vpop.f32.mrf.mxu1  ;;  %v1769_v59 = vmax.f32 %v1370_v57, 0.0  ;;  %v3690_v57 = vpop.permute.xlu1 %689 }
 0x20e   : > { %v1241_v18 = vpop.f32.mrf.mxu2  ;;  %v1307_v1 = vpop.f32.mrf.mxu3 }
 0x20f   : > { %v1242_v6 = vadd.f32 %v1241_v18, %v3537_v53 }
 0x210   : > { %v1371_v40 = vpop.f32.mrf.mxu0 }
 0x211   : > { %v1372_v15 = vadd.f32 %v1371_v40, %v1303_v2 }
 0x213   : > { %v1771_v12 = vmax.f32 %v1372_v15, 0.0  ;;  %1565 = vmatmul.bf16.gmra.mxu3 %v3244_v60  ;;  %v3671_v4 = vpop.f32.mrf.mxu1  ;;  %v1824_v60 = vld [vmem:[%s3916_s4 + $0x8] sm:$0xf] }
 0x214   : > { %1832 = vperm.xlu0 %2477, %v1824_v60   ;;  %v4016_v60 = vld [vmem:[#allocation24_spill] sm:$0xff] }
 0x215   : > { %v3673_v19 = vpack.c.bf16 %v1771_v12, %v1769_v59  ;;  %v4014_v12 = vld [vmem:[#allocation30_spill] sm:$0xff] }
 0x216   : > { %v1243_v3 = vpop.f32.mrf.mxu2  ;;  %v1310_v8 = vpop.f32.mrf.mxu3  ;;  %2343 = vmatmul.msk.bf16.gmra.mxu1 %vm1022_vm8, %v3246_v39  ;;  %v1308_v39 = vadd.f32 %v1307_v1, %v1239_v9  ;;  %v4013_v1 = vld [vmem:[#allocation31_spill] sm:$0xff] }
 0x217   : > { %v1111_v15 = vadd.f32 %v4013_v1, %v3690_v57 }
 0x218   : > { %v1374_v50 = vpop.f32.mrf.mxu0 }
 0x219   : > { %v1375_v20 = vadd.f32 %v1374_v50, %v1306_v13  ;;  %v1180_v50 = vadd.f32 %v4014_v12, %v1111_v15  ;;  %v1244_v13 = vadd.f32 %v1243_v3, %v3558_v36 }
 0x21b   : > { %1501 = vmatmul.bf16.gmra.mxu2 %v3040_v43  ;;  %1629 = vmatmul.bf16.gmra.mxu0 %v3218_v48  ;;  %v3680_v51 = vpop.f32.mrf.mxu1  ;;  %v1773_v46 = vmax.f32 %v1375_v20, 0.0 }
 0x21e   : > { %v1246_v38 = vpop.f32.mrf.mxu2  ;;  %v1312_v62 = vpop.f32.mrf.mxu3 }
 0x21f   : > { %v1247_v44 = vadd.f32 %v1246_v38, %v3349_v24  ;;  %v1311_v38 = vadd.f32 %v1310_v8, %v1242_v6 }
 0x220   : > { %v1376_v37 = vpop.f32.mrf.mxu0 }
 0x221   : > { %v1377_v43 = vadd.f32 %v1376_v37, %v1308_v39 }
 0x223   : > { %v1775_v48 = vmax.f32 %v1377_v43, 0.0  ;;  %1570 = vmatmul.bf16.gmra.mxu3 %v3290_v52  ;;  %v3688_v2 = vpop.f32.mrf.mxu1  ;;  %v4015_v52 = vld [vmem:[#allocation6_spill] sm:$0xff]  ;;  %v1313_v43 = vadd.f32 %v1312_v62, %v1244_v13  ;;  %v4017_v62 = vld [vmem:[#allocation9_spill] sm:$0xff] }
 0x224   : > { %v1823_v13 = vld [vmem:[%s3916_s4] sm:$0xff] }
 0x225   : > { %v1809_v40 = vpack.c.bf16 %v1775_v48, %v1773_v46  ;;  %1827 = vperm.xlu2 %2476, %v1823_v13  }
 0x226   : > { %v1248_v23 = vpop.f32.mrf.mxu2  ;;  %v1315_v34 = vpop.f32.mrf.mxu3  ;;  %2344 = vmatmul.msk.bf16.gmra.mxu1 %vm1022_vm8, %v4012_v56 }
 0x227   : > { %v1316_v24 = vadd.f32 %v1315_v34, %v1247_v44  ;;  %v1249_v39 = vadd.f32 %v1248_v23, %v1180_v50  ;;  %v4018_v23 = vld [vmem:[#allocation33_spill] sm:$0xff] }
 0x228   : > { %v1379_v59 = vpop.f32.mrf.mxu0 }
 0x229   : > { %v1380_v46 = vadd.f32 %v1379_v59, %v1311_v38 }
 0x22b   : > { %1506 = vmatmul.bf16.gmra.mxu2 %v4015_v52  ;;  %1634 = vmatmul.bf16.gmra.mxu0 %v4016_v60  ;;  %v3700_v9 = vpop.f32.mrf.mxu1  ;;  %v1777_v53 = vmax.f32 %v1380_v46, 0.0 }
 0x22e   : > { %v1251_v20 = vpop.f32.mrf.mxu2  ;;  %v1317_v37 = vpop.f32.mrf.mxu3 }
 0x22f   : > { %v1252_v44 = vadd.f32 %v1251_v20, %v3378_v17  ;;  %v1318_v48 = vadd.f32 %v1317_v37, %v1249_v39 }
 0x230   : > { %v1381_v34 = vpop.f32.mrf.mxu0 }
 0x231   : > { %v1382_v56 = vadd.f32 %v1381_v34, %v1313_v43 }
 0x233   : > { %v1779_v18 = vmax.f32 %v1382_v56, 0.0  ;;  %1575 = vmatmul.bf16.gmra.mxu3 %v3340_v42  ;;  %v3705_v1 = vpop.f32.mrf.mxu1 }
 0x235   : > { %v1811_v15 = vpack.c.bf16 %v1779_v18, %v1777_v53  ;;  %v4023_v53 = vld [vmem:[#allocation26_spill] sm:$0xff] }
 0x236   : > { %v3707_v12 = vpop.f32.mrf.mxu2  ;;  %v1320_v36 = vpop.f32.mrf.mxu3  ;;  %2345 = vmatmul.msk.bf16.gmra.mxu1 %vm1022_vm8, %v3342_v49 }
 0x237   : > { %v3711_v3 = vadd.f32 %v1320_v36, %v1252_v44  ;;  %1847 = vmatpush.bf16.msrb.mxu2 %v1811_v15  ;;  %v4020_v44 = vld [vmem:[#allocation2_spill] sm:$0xff]  ;;  %v4024_v36 = vld [vmem:[#allocation44_spill] sm:$0xff] }
 0x238   : > { %v1384_v17 = vpop.f32.mrf.mxu0 }
 0x239   : > { %v1385_v8 = vadd.f32 %v1384_v17, %v1316_v24  ;;  %v4026_v17 = vld [vmem:[#allocation45_spill] sm:$0xff] }
 0x23b   : > { %1511 = vmatmul.bf16.gmra.mxu2 %v4017_v62  ;;  %1639 = vmatmul.bf16.gmra.mxu0 %v4018_v23  ;;  %v3715_v59 = vpop.f32.mrf.mxu1  ;;  %v1781_v52 = vmax.f32 %v1385_v8, 0.0  ;;  %v4027_v62 = vld [vmem:[#allocation19_spill] sm:$0xff]  ;;  %v4028_v23 = vld [vmem:[#allocation40_spill] sm:$0xff] }
 0x23c   : > { %1848 = vmatpush.bf16.msrb.mxu2 %v1809_v40 }
 0x23e   : > { %v3717_v42 = vpop.f32.mrf.mxu2  ;;  %v3719_v50 = vpop.f32.mrf.mxu3 }
 0x240   : > { %1849 = vmatpush.bf16.msrb.mxu2 %v3673_v19  ;;  %v1386_v6 = vpop.f32.mrf.mxu0 }
 0x241   : > { %v1387_v49 = vadd.f32 %v1386_v6, %v1318_v48  ;;  %v1121_v6 = vadd.f32 %v4028_v23, %v4027_v62 }
 0x243   : > { %v1783_v60 = vmax.f32 %v1387_v49, 0.0  ;;  %1580 = vmatmul.bf16.gmra.mxu3 %v3392_v55  ;;  %v3723_v24 = vpop.f32.mrf.mxu1  ;;  %v4019_v55 = vld [vmem:[#allocation12_spill] sm:$0xff] }
 0x244   : > { %1850 = vmatpush.bf16.msrb.mxu2 %v3661_v63 }
 0x245   : > { %v3729_v40 = vpack.c.bf16 %v1783_v60, %v1781_v52  ;;  %v4030_v60 = vld [vmem:[#allocation43_spill] sm:$0xff] }
 0x246   : > { %v1258_v38 = vpop.f32.mrf.mxu2  ;;  %v1325_v39 = vpop.f32.mrf.mxu3  ;;  %2346 = vmatmul.msk.bf16.gmra.mxu1 %vm1022_vm8, %v3394_v21 }
 0x248   : > { %1851 = vmatpush.bf16.msrb.mxu2 %v3651_v47  ;;  %v3734_v19 = vpop.f32.mrf.mxu0 }
 0x24b   : > { %1516 = vmatmul.bf16.gmra.mxu2 %v4019_v55  ;;  %1644 = vmatmul.bf16.gmra.mxu0 %v3368_v54  ;;  %v3738_v20 = vpop.f32.mrf.mxu1  ;;  %v4031_v55 = vld [vmem:[#allocation3_spill] sm:$0xff] }
 0x24c   : > { %1852 = vmatpush.bf16.msrb.mxu2 %v3636_v58 }
 0x24e   : > { %v1261_v63 = vpop.f32.mrf.mxu2  ;;  %v1327_v37 = vpop.f32.mrf.mxu3 }
 0x250   : > { %1853 = vmatpush.bf16.msrb.mxu2 %v3615_v0  ;;  %v1391_v43 = vpop.f32.mrf.mxu0  ;;  %v1414_v0 = vadd.f32 %v3570_v10, %v3344_v45 }
 0x253   : > { %1585 = vmatmul.bf16.gmra.mxu3 %v3434_v26  ;;  %v3743_v21 = vpop.f32.mrf.mxu1 }
 0x254   : > { %1854 = vmatpush.bf16.msrb.mxu2 %v3584_v31 }
 0x256   : > { %v1263_v47 = vpop.f32.mrf.mxu2  ;;  %v1330_v46 = vpop.f32.mrf.mxu3  ;;  %2347 = vmatmul.msk.bf16.gmra.mxu1 %vm1022_vm8, %v3436_v61  ;;  %v1416_v61 = vadd.f32 %v3595_v14, %v4023_v53  ;;  %v4032_v14 = vld [vmem:[#allocation41_spill] sm:$0xff] }
 0x258   : > { %v1394_v54 = vpop.f32.mrf.mxu0 }
 0x25b   : > { %1521 = vmatmul.bf16.gmra.mxu2 %v4020_v44  ;;  %1649 = vmatmul.bf16.gmra.mxu0 %v3408_v22  ;;  %v3750_v58 = vpop.f32.mrf.mxu1  ;;  %v4025_v22 = vld [vmem:[#allocation25_spill] sm:$0xff] }
 0x25c   : > { %4021 = vst [vmem:[#allocation28_spill] sm:$0xff] %v3750_v58  ;;  %v1126_v8 = vadd.f32 %v4026_v17, %v4025_v22 }
 0x25e   : > { %v1332_v26 = vpop.f32.mrf.mxu3  ;;  %v1482_v48 = vpop.f32.mrf.mxu2  ;;  %v1195_v13 = vadd.f32 %v4030_v60, %v1126_v8 }
 0x25f   : > { %v1483_v34 = vadd.f32 %v1482_v48, %v1414_v0  ;;  %v4034_v0 = vld [vmem:[#allocation32_spill] sm:$0xff]  ;;  %v4035_v48 = vld [vmem:[#allocation37_spill] sm:$0xff] }
 0x260   : > { %v1396_v56 = vpop.f32.mrf.mxu0  ;;  %v1116_v53 = vadd.f32 %v4035_v48, %v4034_v0 }
 0x263   : > { %1590 = vmatmul.bf16.gmra.mxu3 %v3474_v5  ;;  %v3755_v31 = vpop.f32.mrf.mxu1  ;;  %v4029_v5 = vld [vmem:[#allocation42_spill] sm:$0xff] }
 0x264   : > { %4022 = vst [vmem:[#allocation31_spill] sm:$0xff] %v3755_v31  ;;  %v1262_v52 = vadd.f32 %v1261_v63, %v4029_v5 }
 0x266   : > { %v1484_v18 = vpop.f32.mrf.mxu2  ;;  %v1551_v15 = vpop.f32.mrf.mxu3  ;;  %2348 = vmatmul.msk.bf16.gmra.mxu1 %vm1022_vm8, %v4024_v36  ;;  %v4036_v36 = vld [vmem:[#allocation38_spill] sm:$0xff]  ;;  %v1331_v17 = vadd.f32 %v1330_v46, %v1262_v52  ;;  %v4040_v52 = vld [vmem:[#allocation47_spill] sm:$0xff] }
 0x267   : > { %v1485_v45 = vadd.f32 %v1484_v18, %v1416_v61  ;;  %v1552_v10 = vadd.f32 %v1551_v15, %v1483_v34  ;;  %v1190_v61 = vadd.f32 %v4036_v36, %v1121_v6  ;;  %v4037_v34 = vld [vmem:[#allocation27_spill] sm:$0xff]  ;;  %v1264_v15 = vadd.f32 %v1263_v47, %v1195_v13 }
 0x268   : > { %v1399_v49 = vpop.f32.mrf.mxu0  ;;  %v1419_v18 = vadd.f32 %v3607_v16, %v4037_v34 }
 0x269   : > { %v1259_v23 = vadd.f32 %v1258_v38, %v1190_v61  ;;  %v1333_v8 = vadd.f32 %v1332_v26, %v1264_v15  ;;  %v1400_v60 = vadd.f32 %v1399_v49, %v1331_v17  ;;  %v4044_v15 = vld [vmem:[#allocation16_spill] sm:$0xff] }
 0x26a   : > { %v1424_v17 = vadd.f32 %v3628_v32, %v4044_v15  ;;  %v4052_v15 = vld [vmem:[#allocation52_spill] sm:$0xff] }
 0x26b   : > { %1526 = vmatmul.bf16.gmra.mxu2 %v4031_v55  ;;  %1654 = vmatmul.bf16.gmra.mxu0 %v4032_v14  ;;  %v3769_v44 = vpop.f32.mrf.mxu1  ;;  %v4038_v14 = vld [vmem:[#allocation36_spill] sm:$0xff]  ;;  %v1328_v48 = vadd.f32 %v1327_v37, %v1259_v23  ;;  %v1793_v46 = vmax.f32 %v1400_v60, 0.0 }
 0x26c   : > { %4033 = vst [vmem:[#allocation30_spill] sm:$0xff] %v3769_v44  ;;  %v1185_v62 = vadd.f32 %v4038_v14, %v1116_v53  ;;  %v4039_v44 = vld [vmem:[#allocation39_spill] sm:$0xff] }
 0x26d   : > { %v1257_v31 = vadd.f32 %v3717_v42, %v4039_v44  ;;  %v1397_v47 = vadd.f32 %v1396_v56, %v1328_v48  ;;  %v4041_v44 = vld [vmem:[#allocation48_spill] sm:$0xff] }
 0x26e   : > { %v1487_v63 = vpop.f32.mrf.mxu2  ;;  %v1553_v5 = vpop.f32.mrf.mxu3  ;;  %v1254_v36 = vadd.f32 %v3707_v12, %v1185_v62 }
 0x26f   : > { %v1488_v55 = vadd.f32 %v1487_v63, %v1419_v18  ;;  %v1554_v22 = vadd.f32 %v1553_v5, %v1485_v45  ;;  %v1326_v16 = vadd.f32 %v1325_v39, %v1257_v31  ;;  %v1791_v61 = vmax.f32 %v1397_v47, 0.0 }
 0x270   : > { %v1401_v58 = vpop.f32.mrf.mxu0  ;;  %v1323_v45 = vadd.f32 %v3719_v50, %v1254_v36  ;;  %v1390_v39 = vadd.f32 %v3734_v19, %v3711_v3  ;;  %v4042_v50 = vld [vmem:[#allocation4_spill] sm:$0xff] }
 0x271   : > { %v1402_v6 = vadd.f32 %v1401_v58, %v1333_v8  ;;  %v1395_v49 = vadd.f32 %v1394_v54, %v1326_v16  ;;  %v4043_v54 = vld [vmem:[#allocation46_spill] sm:$0xff] }
 0x272   : > { %v1392_v53 = vadd.f32 %v1391_v43, %v1323_v45  ;;  %v1785_v18 = vmax.f32 %v1390_v39, 0.0  ;;  %v4049_v45 = vld [vmem:[#allocation21_spill] sm:$0xff] }
 0x273   : > { %v1795_v38 = vmax.f32 %v1402_v6, 0.0  ;;  %1595 = vmatmul.bf16.gmra.mxu3 %v4040_v52  ;;  %v3781_v26 = vpop.f32.mrf.mxu1  ;;  %v1789_v58 = vmax.f32 %v1395_v49, 0.0 }
 0x274   : > { %v1787_v62 = vmax.f32 %v1392_v53, 0.0 }
 0x275   : > { %v1819_v13 = vpack.c.bf16 %v1795_v38, %v1793_v46  ;;  %v1817_v34 = vpack.c.bf16 %v1791_v61, %v1789_v58  ;;  %v4046_v46 = vld [vmem:[#allocation34_spill] sm:$0xff]  ;;  %v4048_v38 = vld [vmem:[#allocation49_spill] sm:$0xff] }
 0x276   : > { %v1489_v42 = vpop.f32.mrf.mxu2  ;;  %v1556_v37 = vpop.f32.mrf.mxu3  ;;  %2349 = vmatmul.msk.bf16.gmra.mxu1 %vm1022_vm8, %v4041_v44  ;;  %v1815_v5 = vpack.c.bf16 %v1787_v62, %v1785_v18 }
 0x277   : > { %v1557_v12 = vadd.f32 %v1556_v37, %v1488_v55  ;;  %1865 = vmatpush.bf16.msrb.mxu3 %v1819_v13  ;;  %v4045_v55 = vld [vmem:[#allocation23_spill] sm:$0xff] }
 0x278   : > { %v1620_v56 = vpop.f32.mrf.mxu0  ;;  %v1426_v14 = vadd.f32 %v3645_v29, %v4045_v55  ;;  %v1429_v29 = vadd.f32 %v3649_v11, %v4049_v45  ;;  %v2356_v11 = vld [vmem:[%s3915_s3] sm:$0xf]  ;;  %v4055_v45 = vld [vmem:[#allocation17_spill] sm:$0xff] }
 0x279   : > { %v1621_v31 = vadd.f32 %v1620_v56, %v1552_v10  ;;  %v4050_v56 = vld [vmem:[#allocation51_spill] sm:$0xff]  ;;  %v4054_v55 = vld [vmem:[#allocation10_spill] sm:$0xff] }
 0x27b   : > { %1531 = vmatmul.bf16.gmra.mxu2 %v4042_v50  ;;  %1659 = vmatmul.bf16.gmra.mxu0 %v4043_v54  ;;  %v3790_v43 = vpop.f32.mrf.mxu1 }
 0x27c   : > { %1866 = vmatpush.bf16.msrb.mxu3 %v1817_v34  ;;  %v4051_v34 = vld [vmem:[#allocation13_spill] sm:$0xff] }
 0x27d   : > { %v1431_v50 = vadd.f32 %v3656_v35, %v4051_v34  ;;  %v2440_v35 = vld [vmem:[%s3915_s3 + $0x4] sm:$0xf] }
 0x27e   : > { %v1492_v23 = vpop.f32.mrf.mxu2  ;;  %v1558_v63 = vpop.f32.mrf.mxu3 }
 0x27f   : > { %v1493_v3 = vadd.f32 %v1492_v23, %v1424_v17 }
 0x280   : > { %1867 = vmatpush.bf16.msrb.mxu3 %v1815_v5  ;;  %v1622_v19 = vpop.f32.mrf.mxu0 }
 0x281   : > { %v1623_v10 = vadd.f32 %v1622_v19, %v1554_v22  ;;  %v1421_v22 = vadd.f32 %v3624_v28, %v4046_v46  ;;  %v4053_v19 = vld [vmem:[#allocation50_spill] sm:$0xff] }
 0x283   : > { %1600 = vmatmul.bf16.gmra.mxu3 %v3550_v27  ;;  %v1689_v8 = vpop.f32.mrf.mxu1  ;;  %v4047_v27 = vld [vmem:[#allocation5_spill] sm:$0xff]  ;;  %v1490_v49 = vadd.f32 %v1489_v42, %v1421_v22  ;;  %v2441_v42 = vld [vmem:[%s3915_s3 + $0x4] sm:$0x30] }
 0x284   : > { %1868 = vmatpush.bf16.msrb.mxu3 %v3729_v40  ;;  %v1690_v60 = vadd.f32 %v1689_v8, %v1621_v31 }
 0x285   : > { %v1559_v37 = vadd.f32 %v1558_v63, %v1490_v49  ;;  %v3819_v63 = vor.u32 %v2441_v42, %v2356_v11 }
 0x286   : > { %v1494_v48 = vpop.f32.mrf.mxu2  ;;  %v1561_v6 = vpop.f32.mrf.mxu3  ;;  %2350 = vmatmul.msk.bf16.gmra.mxu1 %vm1022_vm8, %v3552_v7  ;;  %v1750_v13 = vmax.f32 %v1690_v60, 0.0  ;;  %v2358_v60 = vld [vmem:[%s3915_s3 + $0x8] sm:$0x30] }
 0x287   : > { %v1495_v32 = vadd.f32 %v1494_v48, %v1426_v14  ;;  %v1562_v36 = vadd.f32 %v1561_v6, %v1493_v3  ;;  %v1434_v14 = vadd.f32 %v3659_v30, %v4054_v55  ;;  %v3831_v46 = vor.u32 %v2440_v35, %v2358_v60 }
 0x288   : > { %v1625_v16 = vpop.f32.mrf.mxu0  ;;  %v1436_v30 = vadd.f32 %v3667_v41, %v4055_v45 }
 0x289   : > { %v1626_v47 = vadd.f32 %v1625_v16, %v1557_v12 }
 0x28b   : > { %1536 = vmatmul.bf16.gmra.mxu2 %v4047_v27  ;;  %1664 = vmatmul.bf16.gmra.mxu0 %v4048_v38  ;;  %v1691_v40 = vpop.f32.mrf.mxu1 }
 0x28c   : > { %v1692_v52 = vadd.f32 %v1691_v40, %v1623_v10 }
 0x28e   : > { %v1752_v53 = vmax.f32 %v1692_v52, 0.0  ;;  %v1497_v7 = vpop.f32.mrf.mxu2  ;;  %v1563_v61 = vpop.f32.mrf.mxu3 }
 0x28f   : > { %v1498_v44 = vadd.f32 %v1497_v7, %v1429_v29  ;;  %v1564_v12 = vadd.f32 %v1563_v61, %v1495_v32 }
 0x290   : > { %v3806_v39 = vpack.c.bf16 %v1752_v53, %v1750_v13  ;;  %v1627_v28 = vpop.f32.mrf.mxu0 }
 0x291   : > { %v1628_v58 = vadd.f32 %v1627_v28, %v1559_v37  ;;  %v4056_v37 = vld [vmem:[#allocation53_spill] sm:$0xff]  ;;  %v4057_v28 = vld [vmem:[#allocation8_spill] sm:$0xff] }
 0x293   : > { %1605 = vmatmul.bf16.gmra.mxu3 %v4050_v56  ;;  %v1694_v31 = vpop.f32.mrf.mxu1 }
 0x294   : > { %v1695_v62 = vadd.f32 %v1694_v31, %v1626_v47 }
 0x296   : > { %v1499_v54 = vpop.f32.mrf.mxu2  ;;  %v1566_v18 = vpop.f32.mrf.mxu3  ;;  %2351 = vmatmul.msk.bf16.gmra.mxu1 %vm1022_vm8, %v4052_v15  ;;  %v1754_v48 = vmax.f32 %v1695_v62, 0.0  ;;  %v4058_v15 = vld [vmem:[#allocation18_spill] sm:$0xff] }
 0x297   : > { %v1500_v17 = vadd.f32 %v1499_v54, %v1431_v50  ;;  %v1567_v23 = vadd.f32 %v1566_v18, %v1498_v44 }
 0x298   : > { %v1630_v5 = vpop.f32.mrf.mxu0 }
 0x299   : > { %v1631_v3 = vadd.f32 %v1630_v5, %v1562_v36 }
 0x29b   : > { %1669 = vmatmul.bf16.gmra.mxu0 %v4053_v19  ;;  %1855 = vmatmul.bf16.vlgmr.msrb.gmra.mxu2 %v3819_v63  ;;  %v1696_v10 = vpop.f32.mrf.mxu1 }
 0x29c   : > { %v1697_v8 = vadd.f32 %v1696_v10, %v1628_v58  ;;  %v1439_v58 = vadd.f32 %v3671_v4, %v4057_v28 }
 0x29e   : > { %v1756_v6 = vmax.f32 %v1697_v8, 0.0  ;;  %v1502_v32 = vpop.f32.mrf.mxu2  ;;  %v1568_v36 = vpop.f32.mrf.mxu3 }
 0x29f   : > { %v1503_v16 = vadd.f32 %v1502_v32, %v1434_v14  ;;  %v1569_v47 = vadd.f32 %v1568_v36, %v1500_v17  ;;  %v1441_v17 = vadd.f32 %v3680_v51, %v4058_v15 }
 0x2a0   : > { %v3833_v22 = vpack.c.bf16 %v1756_v6, %v1754_v48  ;;  %v1632_v27 = vpop.f32.mrf.mxu0 }
 0x2a1   : > { %v1633_v38 = vadd.f32 %v1632_v27, %v1564_v12 }
 0x2a3   : > { %2362 = vmatmul.msk.bf16.vlgmr.msrb.gmra.mxu3 %vm1022_vm8, %v3831_v46  ;;  %v1699_v40 = vpop.f32.mrf.mxu1 }
 0x2a4   : > { %v1700_v52 = vadd.f32 %v1699_v40, %v1631_v3 }
 0x2a6   : > { %v1504_v29 = vpop.f32.mrf.mxu2  ;;  %v1571_v49 = vpop.f32.mrf.mxu3  ;;  %2352 = vmatmul.msk.bf16.gmra.mxu1 %vm1022_vm8, %v3619_v33  ;;  %v1758_v56 = vmax.f32 %v1700_v52, 0.0 }
 0x2a7   : > { %v1505_v13 = vadd.f32 %v1504_v29, %v1436_v30  ;;  %v1572_v53 = vadd.f32 %v1571_v49, %v1503_v16 }
 0x2a8   : > { %v1635_v7 = vpop.f32.mrf.mxu0 }
 0x2a9   : > { %v1636_v61 = vadd.f32 %v1635_v7, %v1567_v23 }
 0x2ab   : > { %1674 = vmatmul.bf16.gmra.mxu0 %v4056_v37  ;;  %v1701_v44 = vpop.f32.mrf.mxu1 }
 0x2ac   : > { %v1702_v12 = vadd.f32 %v1701_v44, %v1633_v38 }
 0x2ae   : > { %v1760_v31 = vmax.f32 %v1702_v12, 0.0  ;;  %v1507_v62 = vpop.f32.mrf.mxu2  ;;  %v1573_v41 = vpop.f32.mrf.mxu3 }
 0x2af   : > { %v1508_v11 = vadd.f32 %v1507_v62, %v1439_v58  ;;  %v1574_v42 = vadd.f32 %v1573_v41, %v1505_v13  ;;  %v4059_v62 = vld [vmem:[#allocation35_spill] sm:$0xff] }
 0x2b0   : > { %v3844_v34 = vpack.c.bf16 %v1760_v31, %v1758_v56  ;;  %v1637_v33 = vpop.f32.mrf.mxu0  ;;  %v1454_v41 = vadd.f32 %v3723_v24, %v4059_v62 }
 0x2b1   : > { %v1638_v50 = vadd.f32 %v1637_v33, %v1569_v47 }
 0x2b3   : > { %v1704_v54 = vpop.f32.mrf.mxu1 }
 0x2b4   : > { %v1705_v18 = vadd.f32 %v1704_v54, %v1636_v61 }
 0x2b6   : > { %v1509_v23 = vpop.f32.mrf.mxu2  ;;  %v1576_v5 = vpop.f32.mrf.mxu3  ;;  %2353 = vmatmul.msk.bf16.gmra.mxu1 %vm1022_vm8, %v3640_v25  ;;  %v1762_v60 = vmax.f32 %v1705_v18, 0.0 }
 0x2b7   : > { %v1510_v4 = vadd.f32 %v1509_v23, %v1441_v17  ;;  %v1577_v3 = vadd.f32 %v1576_v5, %v1508_v11  ;;  %v4060_v17 = vld [vmem:[#allocation14_spill] sm:$0xff] }
 0x2b8   : > { %v1640_v19 = vpop.f32.mrf.mxu0  ;;  %v1444_v23 = vadd.f32 %v3688_v2, %v4060_v17 }
 0x2b9   : > { %v1641_v10 = vadd.f32 %v1640_v19, %v1572_v53 }
 0x2bb   : > { %v1706_v8 = vpop.f32.mrf.mxu1 }
 0x2bc   : > { %v1707_v35 = vadd.f32 %v1706_v8, %v1638_v50 }
 0x2be   : > { %v1764_v55 = vmax.f32 %v1707_v35, 0.0  ;;  %v1512_v14 = vpop.f32.mrf.mxu2  ;;  %v1578_v48 = vpop.f32.mrf.mxu3 }
 0x2bf   : > { %v1579_v6 = vadd.f32 %v1578_v48, %v1510_v4  ;;  %v4061_v4 = vld [vmem:[#allocation15_spill] sm:$0xff]  ;;  %v1513_v19 = vadd.f32 %v1512_v14, %v1444_v23 }
 0x2c0   : > { %v3850_v32 = vpack.c.bf16 %v1764_v55, %v1762_v60  ;;  %v1642_v36 = vpop.f32.mrf.mxu0 }
 0x2c1   : > { %v1643_v25 = vadd.f32 %v1642_v36, %v1574_v42 }
 0x2c3   : > { %v1709_v51 = vpop.f32.mrf.mxu1 }
 0x2c4   : > { %v1710_v16 = vadd.f32 %v1709_v51, %v1641_v10  ;;  %v1456_v10 = vadd.f32 %v3738_v20, %v3690_v57 }
 0x2c6   : > { %v1514_v47 = vpop.f32.mrf.mxu2  ;;  %v1581_v27 = vpop.f32.mrf.mxu3  ;;  %v1766_v45 = vmax.f32 %v1710_v16, 0.0 }
 0x2c7   : > { %v1582_v8 = vadd.f32 %v1581_v27, %v1513_v19 }
 0x2c8   : > { %v1645_v38 = vpop.f32.mrf.mxu0 }
 0x2c9   : > { %v1646_v44 = vadd.f32 %v1645_v38, %v1577_v3  ;;  %v1446_v3 = vadd.f32 %v3700_v9, %v4061_v4 }
 0x2cb   : > { %v1711_v40 = vpop.f32.mrf.mxu1  ;;  %v1515_v24 = vadd.f32 %v1514_v47, %v1446_v3 }
 0x2cc   : > { %v1712_v52 = vadd.f32 %v1711_v40, %v1643_v25  ;;  %v4062_v40 = vld [vmem:[#allocation22_spill] sm:$0xff] }
 0x2cd   : > { %v1459_v9 = vadd.f32 %v3743_v21, %v4062_v40 }
 0x2ce   : > { %v1768_v30 = vmax.f32 %v1712_v52, 0.0  ;;  %v1517_v29 = vpop.f32.mrf.mxu2  ;;  %v1583_v49 = vpop.f32.mrf.mxu3 }
 0x2d0   : > { %v3852_v13 = vpack.c.bf16 %v1768_v30, %v1766_v45  ;;  %v1647_v53 = vpop.f32.mrf.mxu0 }
 0x2d1   : > { %v1648_v28 = vadd.f32 %v1647_v53, %v1579_v6  ;;  %v1584_v6 = vadd.f32 %v1583_v49, %v1515_v24  ;;  %v4063_v53 = vld [vmem:[#allocation11_spill] sm:$0xff] }
 0x2d2   : > { %v1449_v49 = vadd.f32 %v3705_v1, %v4063_v53  ;;  %v4066_v53 = vld [vmem:[#allocation29_spill] sm:$0xff] }
 0x2d3   : > { %v1714_v7 = vpop.f32.mrf.mxu1 }
 0x2d4   : > { %v1715_v58 = vadd.f32 %v1714_v7, %v1646_v44  ;;  %v4064_v44 = vld [vmem:[#allocation7_spill] sm:$0xff] }
 0x2d6   : > { %v1519_v61 = vpop.f32.mrf.mxu2  ;;  %v1586_v37 = vpop.f32.mrf.mxu3  ;;  %v1770_v11 = vmax.f32 %v1715_v58, 0.0  ;;  %v4065_v58 = vld [vmem:[#allocation28_spill] sm:$0xff] }
 0x2d8   : > { %v1650_v12 = vpop.f32.mrf.mxu0 }
 0x2d9   : > { %v1651_v36 = vadd.f32 %v1650_v12, %v1582_v8  ;;  %v1451_v12 = vadd.f32 %v3715_v59, %v4064_v44 }
 0x2db   : > { %v1716_v56 = vpop.f32.mrf.mxu1  ;;  %v1520_v21 = vadd.f32 %v1519_v61, %v1451_v12  ;;  %v4068_v12 = vld [vmem:[#allocation19_spill] sm:$0xff] }
 0x2dc   : > { %v1717_v31 = vadd.f32 %v1716_v56, %v1648_v28  ;;  %v1518_v28 = vadd.f32 %v1517_v29, %v1449_v49  ;;  %v1461_v56 = vadd.f32 %v4065_v58, %v4034_v0  ;;  %v3887_v58 = vpop.permute.xlu2 %1827 }
 0x2de   : > { %v1772_v42 = vmax.f32 %v1717_v31, 0.0  ;;  %v1522_v33 = vpop.f32.mrf.mxu2  ;;  %v1588_v50 = vpop.f32.mrf.mxu3  ;;  %v1587_v31 = vadd.f32 %v1586_v37, %v1518_v28  ;;  %v4069_v28 = vld [vmem:[#allocation30_spill] sm:$0xff] }
 0x2df   : > { %v1523_v54 = vadd.f32 %v1522_v33, %v1454_v41  ;;  %v1589_v33 = vadd.f32 %v1588_v50, %v1520_v21 }
 0x2e0   : > { %v3856_v18 = vpack.c.bf16 %v1772_v42, %v1770_v11  ;;  %v1652_v15 = vpop.f32.mrf.mxu0 }
 0x2e1   : > { %v1653_v16 = vadd.f32 %v1652_v15, %v1584_v6 }
 0x2e3   : > { %v1719_v5 = vpop.f32.mrf.mxu1 }
 0x2e4   : > { %v1720_v38 = vadd.f32 %v1719_v5, %v1651_v36 }
 0x2e6   : > { %v1524_v35 = vpop.f32.mrf.mxu2  ;;  %v1591_v60 = vpop.f32.mrf.mxu3  ;;  %v1774_v14 = vmax.f32 %v1720_v38, 0.0 }
 0x2e7   : > { %v1525_v55 = vadd.f32 %v1524_v35, %v1456_v10  ;;  %v1592_v48 = vadd.f32 %v1591_v60, %v1523_v54 }
 0x2e8   : > { %v1655_v51 = vpop.f32.mrf.mxu0 }
 0x2e9   : > { %v1656_v54 = vadd.f32 %v1655_v51, %v1587_v31 }
 0x2eb   : > { %v1721_v2 = vpop.f32.mrf.mxu1 }
 0x2ec   : > { %v1722_v25 = vadd.f32 %v1721_v2, %v1653_v16 }
 0x2ee   : > { %v1776_v52 = vmax.f32 %v1722_v25, 0.0  ;;  %v1527_v45 = vpop.f32.mrf.mxu2  ;;  %v1593_v57 = vpop.f32.mrf.mxu3 }
 0x2ef   : > { %v1528_v20 = vadd.f32 %v1527_v45, %v1459_v9  ;;  %v1594_v47 = vadd.f32 %v1593_v57, %v1525_v55 }
 0x2f0   : > { %v1810_v27 = vpack.c.bf16 %v1776_v52, %v1774_v14  ;;  %v1657_v30 = vpop.f32.mrf.mxu0 }
 0x2f1   : > { %v1658_v23 = vadd.f32 %v1657_v30, %v1589_v33 }
 0x2f3   : > { %v1724_v7 = vpop.f32.mrf.mxu1 }
 0x2f4   : > { %v1725_v1 = vadd.f32 %v1724_v7, %v1656_v54 }
 0x2f6   : > { %v1529_v62 = vpop.f32.mrf.mxu2  ;;  %v1596_v41 = vpop.f32.mrf.mxu3  ;;  %v1778_v3 = vmax.f32 %v1725_v1, 0.0 }
 0x2f7   : > { %v1530_v11 = vadd.f32 %v1529_v62, %v1461_v56  ;;  %v1597_v42 = vadd.f32 %v1596_v41, %v1528_v20 }
 0x2f8   : > { %v1660_v15 = vpop.f32.mrf.mxu0 }
 0x2f9   : > { %v1661_v17 = vadd.f32 %v1660_v15, %v1592_v48 }
 0x2fb   : > { %v1726_v5 = vpop.f32.mrf.mxu1 }
 0x2fc   : > { %v1727_v4 = vadd.f32 %v1726_v5, %v1658_v23  ;;  %v1833_v23 = vpop.permute.xlu0 %1832 }
 0x2fe   : > { %v1780_v59 = vmax.f32 %v1727_v4, 0.0  ;;  %v1532_v29 = vpop.f32.mrf.mxu2  ;;  %v1598_v19 = vpop.f32.mrf.mxu3 }
 0x2ff   : > { %v1599_v10 = vadd.f32 %v1598_v19, %v1530_v11 }
 0x300   : > { %v1812_v0 = vpack.c.bf16 %v1780_v59, %v1778_v3  ;;  %v1662_v61 = vpop.f32.mrf.mxu0 }
 0x301   : > { %v1663_v60 = vadd.f32 %v1662_v61, %v1594_v47  ;;  %v4070_v61 = vld [vmem:[#allocation20_spill] sm:$0xff] }
 0x302   : > { %1875 = vmatpush.bf16.msra.mxu2 %v1812_v0 }
 0x303   : > { %v1729_v37 = vpop.f32.mrf.mxu1 }
 0x304   : > { %v1730_v24 = vadd.f32 %v1729_v37, %v1661_v17  ;;  %v1469_v37 = vadd.f32 %v3781_v26, %v4070_v61 }
 0x306   : > { %v1534_v8 = vpop.f32.mrf.mxu2  ;;  %v1601_v35 = vpop.f32.mrf.mxu3  ;;  %1876 = vmatpush.bf16.msra.mxu2 %v1810_v27  ;;  %v1782_v6 = vmax.f32 %v1730_v24, 0.0 }
 0x308   : > { %v1665_v50 = vpop.f32.mrf.mxu0 }
 0x309   : > { %v1666_v14 = vadd.f32 %v1665_v50, %v1597_v42 }
 0x30a   : > { %1877 = vmatpush.bf16.msra.mxu2 %v3856_v18 }
 0x30b   : > { %v1731_v55 = vpop.f32.mrf.mxu1 }
 0x30c   : > { %v1732_v48 = vadd.f32 %v1731_v55, %v1663_v60 }
 0x30e   : > { %v1784_v36 = vmax.f32 %v1732_v48, 0.0  ;;  %v1537_v51 = vpop.f32.mrf.mxu2  ;;  %v1603_v16 = vpop.f32.mrf.mxu3  ;;  %1878 = vmatpush.bf16.msra.mxu2 %v3852_v13 }
 0x30f   : > { %v1538_v60 = vadd.f32 %v1537_v51, %v1469_v37 }
 0x310   : > { %v3874_v38 = vpack.c.bf16 %v1784_v36, %v1782_v6  ;;  %v1667_v2 = vpop.f32.mrf.mxu0 }
 0x311   : > { %v1668_v52 = vadd.f32 %v1667_v2, %v1599_v10 }
 0x312   : > { %1879 = vmatpush.bf16.msra.mxu2 %v3850_v32 }
 0x313   : > { %v1734_v25 = vpop.f32.mrf.mxu1 }
 0x314   : > { %v1735_v45 = vadd.f32 %v1734_v25, %v1666_v14 }
 0x316   : > { %v1539_v40 = vpop.f32.mrf.mxu2  ;;  %v1606_v9 = vpop.f32.mrf.mxu3  ;;  %1880 = vmatpush.bf16.msra.mxu2 %v3844_v34  ;;  %v1786_v47 = vmax.f32 %v1735_v45, 0.0  ;;  %v4067_v34 = vld [vmem:[#allocation31_spill] sm:$0xff] }
 0x317   : > { %v1464_v49 = vadd.f32 %v4067_v34, %v4066_v53  ;;  %v1607_v48 = vadd.f32 %v1606_v9, %v1538_v60 }
 0x318   : > { %v1670_v18 = vpop.f32.mrf.mxu0 }
 0x319   : > { %v1533_v56 = vadd.f32 %v1532_v29, %v1464_v49 }
 0x31a   : > { %1881 = vmatpush.bf16.msra.mxu2 %v3833_v22  ;;  %v1466_v22 = vadd.f32 %v4069_v28, %v4068_v12 }
 0x31b   : > { %v1736_v57 = vpop.f32.mrf.mxu1  ;;  %v1602_v31 = vadd.f32 %v1601_v35, %v1533_v56  ;;  %v4071_v35 = vld [vmem:[#allocation25_spill] sm:$0xff] }
 0x31c   : > { %v1737_v20 = vadd.f32 %v1736_v57, %v1668_v52  ;;  %v1471_v50 = vadd.f32 %v3790_v43, %v4071_v35 }
 0x31e   : > { %v1788_v13 = vmax.f32 %v1737_v20, 0.0  ;;  %v1608_v27 = vpop.f32.mrf.mxu3  ;;  %1882 = vmatpush.bf16.msra.mxu2 %v3806_v39  ;;  %v1856_v32 = vpop.f32.mrf.mxu2  ;;  %v1535_v39 = vadd.f32 %v1534_v8, %v1466_v22  ;;  %v1540_v55 = vadd.f32 %v1539_v40, %v1471_v50 }
 0x31f   : > { %v1857_v21 = vadd.f32 %v1856_v32, %v3887_v58 }
 0x320   : > { %v3880_v30 = vpack.c.bf16 %v1788_v13, %v1786_v47  ;;  %v1672_v7 = vpop.f32.mrf.mxu0  ;;  %v1604_v11 = vadd.f32 %v1603_v16, %v1535_v39  ;;  %v1609_v36 = vadd.f32 %v1608_v27, %v1540_v55 }
 0x321   : > { %1883 = vmatmul.bf16.vlgmr.msra.gmra.mxu2 %v3819_v63  ;;  %v1671_v63 = vadd.f32 %v1670_v18, %v1602_v31 }
 0x322   : > { %v1673_v33 = vadd.f32 %v1672_v7, %v1604_v11 }
 0x323   : > { %v1739_v44 = vpop.f32.mrf.mxu1 }
 0x324   : > { %v1740_v54 = vadd.f32 %v1739_v44, %v1671_v63 }
 0x326   : > { %v1870_v62 = vpop.f32.mrf.mxu3  ;;  %v1858_v15 = vpop.f32.mrf.mxu2  ;;  %v1790_v3 = vmax.f32 %v1740_v54, 0.0 }
 0x327   : > { %v1871_v41 = vadd.f32 %v1870_v62, %v1857_v21  ;;  %v1859_v5 = vadd.f32 %v1858_v15, %v1833_v23 }
 0x328   : > { %v1675_v4 = vpop.f32.mrf.mxu0 }
 0x329   : > { %v2364_v42 = vmul.f32 -1.442695, %v1871_v41  ;;  %v1676_v16 = vadd.f32 %v1675_v4, %v1607_v48 }
 0x32b   : > { %2478 = vpow2.f32 %v2364_v42  ;;  %v1741_v17 = vpop.f32.mrf.mxu1 }
 0x32c   : > { %v1742_v1 = vadd.f32 %v1741_v17, %v1673_v33 }
 0x32e   : > { %v1792_v59 = vmax.f32 %v1742_v1, 0.0  ;;  %v1872_v29 = vpop.f32.mrf.mxu3 }
 0x32f   : > { %v1873_v19 = vadd.f32 %v1872_v29, %v1859_v5 }
 0x330   : > { %v1818_v10 = vpack.c.bf16 %v1792_v59, %v1790_v3  ;;  %v1677_v6 = vpop.f32.mrf.mxu0 }
 0x331   : > { %v2479_v0 = vpop.eup %2478  ;;  %1991 = vst [vmem:[%s3894_s11 + $0x10] sm:$0xf] %v1873_v19  ;;  %v1678_v25 = vadd.f32 %v1677_v6, %v1609_v36 }
 0x332   : > { %v1920_v24 = vadd.f32 1.0, %v2479_v0 }
 0x333   : > { %v1744_v8 = vpop.f32.mrf.mxu1 }
 0x334   : > { %2480 = vrcp.f32 %v1920_v24  ;;  %v1745_v14 = vadd.f32 %v1744_v8, %v1676_v16  ;;  %v1935_v26 = vand.u32 2147483648, %v1920_v24  ;;  %v1933_v43 = vand.u32 2147483647, %v1920_v24 }
 0x335   : > { %vm1929_vm10 = vweird.f32 %v1920_v24 }
 0x336   : > { %v1794_v20 = vmax.f32 %v1745_v14, 0.0  ;;  %v1936_v9 = vor.u32 1.1754944e-38, %v1935_v26  ;;  %vm1934_vm12 = vcmp.eq.f32.partialorder %v1933_v43, 8.507059e+37 }
 0x33a   : > { %v2481_v2 = vpop.eup %2480 }
 0x33b   : > { %v1925_v18 = vmul.f32 %v2481_v2, %v1920_v24  ;;  %v1746_v52 = vpop.f32.mrf.mxu1  ;;  %vm1930_vm9 = vweird.f32 %v2481_v2 }
 0x33c   : > { %v1747_v45 = vadd.f32 %v1746_v52, %v1678_v25  ;;  %vm1931_vm11 = vmor %vm1929_vm10, %vm1930_vm9 }
 0x33d   : > { %v1926_v57 = vsub.f32 1.0, %v1925_v18 }
 0x33e   : > { %v1796_v47 = vmax.f32 %v1747_v45, 0.0 }
 0x33f   : > { %v1927_v13 = vmul.f32 %v2481_v2, %v1926_v57 }
 0x340   : > { %v1820_v51 = vpack.c.bf16 %v1796_v47, %v1794_v20 }
 0x341   : > { %v1928_v40 = vadd.f32 %v2481_v2, %v1927_v13 }
 0x342   : > { %1893 = vmatpush.bf16.msra.mxu3 %v1820_v51 }
 0x343   : > { %v1932_v27 = vsel %vm1931_vm11, %v2481_v2, %v1928_v40 }
 0x344   : > { %v1937_v32 = vsel %vm1934_vm12, %v1936_v9, %v1932_v27 }
 0x345   : > { %1988 = vst [vmem:[%s3894_s11] sm:$0xff] %v1937_v32 }
 0x346   : > { %1894 = vmatpush.bf16.msra.mxu3 %v1818_v10 }
 0x34a   : > { %1895 = vmatpush.bf16.msra.mxu3 %v3880_v30 }
 0x34e   : > { %1896 = vmatpush.bf16.msra.mxu3 %v3874_v38 }
 0x351   : > { %2363 = vmatmul.msk.bf16.vlgmr.msra.gmra.mxu3 %vm1022_vm8, %v3831_v46 }
 0x3a4   : > { %v1884_v53 = vpop.f32.mrf.mxu2 }
 0x3a5   : > { %v1885_v34 = vadd.f32 %v1884_v53, %v3887_v58 }
 0x3ac   : > { %v1886_v12 = vpop.f32.mrf.mxu2 }
 0x3ad   : > { %v1887_v28 = vadd.f32 %v1886_v12, %v1833_v23 }
 0x3d4   : > { %v1898_v49 = vpop.f32.mrf.mxu3 }
 0x3d5   : > { %v1899_v7 = vadd.f32 %v1898_v49, %v1885_v34 }
 0x3d7   : > { %v2365_v44 = vmul.f32 -1.442695, %v1899_v7 }
 0x3d9   : > { %2482 = vpow2.f32 %v2365_v44 }
 0x3dc   : > { %v1900_v22 = vpop.f32.mrf.mxu3 }
 0x3dd   : > { %v1901_v56 = vadd.f32 %v1900_v22, %v1887_v28 }
 0x3df   : > { %v2483_v21 = vpop.eup %2482  ;;  %1993 = vst.msk [vmem:[%s3894_s11 + $0x18] sm:$0xf] %vm1992_vm13, %v1901_v56 }
 0x3e0   : > { %v1921_v30 = vadd.f32 1.0, %v2483_v21 }
 0x3e2   : > { %2484 = vrcp.f32 %v1921_v30  ;;  %v1950_v31 = vand.u32 2147483648, %v1921_v30  ;;  %v1948_v58 = vand.u32 2147483647, %v1921_v30  ;;  %vm1944_vm15 = vweird.f32 %v1921_v30 }
 0x3e4   : > { %v1951_v11 = vor.u32 1.1754944e-38, %v1950_v31  ;;  %vm1949_vm2 = vcmp.eq.f32.partialorder %v1948_v58, 8.507059e+37 }
 0x3e8   : > { %v2485_v38 = vpop.eup %2484 }
 0x3e9   : > { %v1940_v39 = vmul.f32 %v2485_v38, %v1921_v30  ;;  %vm1945_vm14 = vweird.f32 %v2485_v38 }
 0x3ea   : > { %vm1946_vm0 = vmor %vm1944_vm15, %vm1945_vm14 }
 0x3eb   : > { %v1941_v46 = vsub.f32 1.0, %v1940_v39 }
 0x3ed   : > { %v1942_v62 = vmul.f32 %v2485_v38, %v1941_v46 }
 0x3ef   : > { %v1943_v41 = vadd.f32 %v2485_v38, %v1942_v62 }
 0x3f1   : > { %v1947_v63 = vsel %vm1946_vm0, %v2485_v38, %v1943_v41 }
 0x3f2   : > { %v1952_v42 = vsel %vm1949_vm2, %v1951_v11, %v1947_v63 }
 0x3f3   : > { %1990 = vst.msk [vmem:[%s3894_s11 + $0x8] sm:$0xff] %vm1989_vm1, %v1952_v42 }
 0x3f4 PF: > { %s15_s18 = sadd.s32 1, %s2492_s18  }
 0x3f5   : > { %p12_p4 = scmp.ge.s32.totalorder %s15_s18, 6  }
 0x3f7   :  { %14 = sbr.rel (!%p12_p4) target bundleno = 1 (0x1), region = 70 }

</bundles_post_ra>
